<compile_context>
chip_gen: v5e
topology: v5e:2x2
jax: 0.10.0
libtpu: 0.0.40
codegen_flags: <defaults>
</compile_context>

<pallas_src>
import jax
import jax.numpy as jnp
from jax.experimental import pallas as pl
from jax.experimental.pallas import tpu as pltpu

EPS = 1e-5
NEG_SLOPE = 0.01                       # nn.LeakyReLU() default
_VMEM_LIMIT = 32 * 1024 * 1024         # safe on v5e / v6e / v7x


def _round_up(x, m):
    return ((x + m - 1) // m) * m


# ---------------------------------------------------------------------------
# Pass 1: tiled conv matmul (MXU, bf16 x bf16 -> f32) + per-tile BN partials.
# ---------------------------------------------------------------------------
def _conv_stats_kernel(p_ref, w_ref, y_ref, sum_ref, sq_ref):
    # p_ref: (TM, K) bf16    w_ref: (K, Cout) bf16 (resident)
    # y_ref: (TM, Cout) bf16 sum_ref/sq_ref: (1, 1, Cout) f32 per-tile partials
    y = jnp.dot(p_ref[...], w_ref[...], preferred_element_type=jnp.float32)
    y_ref[...] = y.astype(y_ref.dtype)
    sum_ref[...] = jnp.sum(y, axis=0, keepdims=True)[None]
    sq_ref[...] = jnp.sum(y * y, axis=0, keepdims=True)[None]


# ---------------------------------------------------------------------------
# Pass 2: fused BatchNorm affine + LeakyReLU on a lane-dense (rows, OW*Cout)
# view of the conv output. All math in f32, store in requested dtype.
# ---------------------------------------------------------------------------
def _bn_lrelu_kernel(y_ref, scale_ref, shift_ref, o_ref):
    z = y_ref[...].astype(jnp.float32) * scale_ref[...] + shift_ref[...]
    o_ref[...] = jnp.where(z >= 0.0, z, NEG_SLOPE * z).astype(o_ref.dtype)


def _im2col(x_nhwc, k, s, p):
    """Plain-JAX glue: extract conv patches -> (N*OH*OW, k*k*C), OH, OW."""
    n, h, w, c = x_nhwc.shape
    xp = jnp.pad(x_nhwc, ((0, 0), (p, p), (p, p), (0, 0)))
    oh = (h + 2 * p - k) // s + 1
    ow = (w + 2 * p - k) // s + 1
    cols = []
    for di in range(k):
        for dj in range(k):
            cols.append(xp[:, di:di + s * oh:s, dj:dj + s * ow:s, :])
    patches = jnp.stack(cols, axis=3)                 # (N, OH, OW, k*k, C)
    return patches.reshape(n * oh * ow, k * k * c), oh, ow


def cbl_forward(x_nhwc, weight, gamma, beta, *, k, s, p,
                out_dtype=jnp.float32, tile_m=1024, tile_r=256):
    """One CBL block: Conv2d (bias dropped; it cancels under train-mode BN)
    -> BatchNorm2d (batch stats) -> LeakyReLU.  weight is (Cout, Cin, k, k)."""
    n = x_nhwc.shape[0]
    cin = x_nhwc.shape[3]
    cout = weight.shape[0]
    kdim = k * k * cin

    # bf16 matmul operands (f32 accumulation on MXU), BN math stays f32.
    x_bf16 = x_nhwc.astype(jnp.bfloat16)
    patches, oh, ow = _im2col(x_bf16, k, s, p)         # (M, kdim) bf16
    m = n * oh * ow

    w_mat = jnp.transpose(weight, (2, 3, 1, 0)).reshape(kdim, cout)
    w_mat = w_mat.astype(jnp.bfloat16)

    # ---- pass 1: tiled conv matmul + per-tile partial BN statistics --------
    tm = min(tile_m, _round_up(m, 8))
    n_tiles = pl.cdiv(m, tm)
    m_pad = n_tiles * tm
    if m_pad != m:         # zero rows contribute 0 to sum/sumsq -> harmless
        patches = jnp.pad(patches, ((0, m_pad - m), (0, 0)))

    y, psum, psq = pl.pallas_call(
        _conv_stats_kernel,
        out_shape=(
            jax.ShapeDtypeStruct((m_pad, cout), jnp.bfloat16),
            jax.ShapeDtypeStruct((n_tiles, 1, cout), jnp.float32),
            jax.ShapeDtypeStruct((n_tiles, 1, cout), jnp.float32),
        ),
        grid=(n_tiles,),
        in_specs=[
            pl.BlockSpec((tm, kdim), lambda i: (i, 0)),      # patches tile
            pl.BlockSpec((kdim, cout), lambda i: (0, 0)),    # resident weights
        ],
        out_specs=(
            pl.BlockSpec((tm, cout), lambda i: (i, 0)),
            pl.BlockSpec((1, 1, cout), lambda i: (i, 0, 0)),
            pl.BlockSpec((1, 1, cout), lambda i: (i, 0, 0)),
        ),
        compiler_params=pltpu.CompilerParams(
            dimension_semantics=("parallel",),
            vmem_limit_bytes=_VMEM_LIMIT),
    )(patches, w_mat)

    # ---- tiny cross-tile reduction + BN fold (plain JAX, O(Cout) work) -----
    inv_m = 1.0 / jnp.float32(m)
    mean = jnp.sum(psum[:, 0, :], axis=0) * inv_m
    ex2 = jnp.sum(psq[:, 0, :], axis=0) * inv_m
    var = jnp.maximum(ex2 - mean * mean, 0.0)          # biased batch variance
    scale = gamma.astype(jnp.float32) * jax.lax.rsqrt(var + EPS)
    shift = beta.astype(jnp.float32) - mean * scale

    # ---- pass 2: lane-dense fused BN affine + LeakyReLU ---------------------
    c_dense = ow * cout                                # lane-dense last dim
    rows = n * oh
    y2 = y[:m].reshape(rows, c_dense)                  # free row-major reshape
    tr = min(tile_r, _round_up(rows, 8))
    n_rt = pl.cdiv(rows, tr)
    rows_pad = n_rt * tr
    if rows_pad != rows:
        y2 = jnp.pad(y2, ((0, rows_pad - rows), (0, 0)))
    scale_row = jnp.tile(scale, ow).reshape(1, c_dense)
    shift_row = jnp.tile(shift, ow).reshape(1, c_dense)

    out2 = pl.pallas_call(
        _bn_lrelu_kernel,
        out_shape=jax.ShapeDtypeStruct((rows_pad, c_dense), out_dtype),
        grid=(n_rt,),
        in_specs=[
            pl.BlockSpec((tr, c_dense), lambda i: (i, 0)),
            pl.BlockSpec((1, c_dense), lambda i: (0, 0)),
            pl.BlockSpec((1, c_dense), lambda i: (0, 0)),
        ],
        out_specs=pl.BlockSpec((tr, c_dense), lambda i: (i, 0)),
        compiler_params=pltpu.CompilerParams(
            dimension_semantics=("parallel",),
            vmem_limit_bytes=_VMEM_LIMIT),
    )(y2, scale_row, shift_row)

    return out2[:rows].reshape(n, oh, ow, cout)


def focus_forward(x_nchw, params):
    """Focus forward. Input/output are NCHW (PyTorch convention)."""
    x = jnp.transpose(x_nchw, (0, 2, 3, 1))            # NCHW -> NHWC
    x = cbl_forward(x, params["w1"], params["g1"], params["be1"],
                    k=3, s=1, p=1, out_dtype=jnp.bfloat16)  # bf16 intermediate
    x = cbl_forward(x, params["w2"], params["g2"], params["be2"],
                    k=3, s=2, p=1, out_dtype=jnp.float32)
    return jnp.transpose(x, (0, 3, 1, 2))              # NHWC -> NCHW


# --------------------------- pure-JAX reference ------------------------------
def _cbl_reference(x_nhwc, weight, gamma, beta, *, s):
    y = jax.lax.conv_general_dilated(
        x_nhwc.astype(jnp.float32),
        jnp.transpose(weight, (2, 3, 1, 0)).astype(jnp.float32),
        window_strides=(s, s), padding=((1, 1), (1, 1)),
        dimension_numbers=("NHWC", "HWIO", "NHWC"))
    mean = jnp.mean(y, axis=(0, 1, 2))
    var = jnp.mean((y - mean) ** 2, axis=(0, 1, 2))
    z = (y - mean) * jax.lax.rsqrt(var + EPS) * gamma + beta
    return jnp.where(z >= 0.0, z, NEG_SLOPE * z)


def focus_reference(x_nchw, params):
    x = jnp.transpose(x_nchw, (0, 2, 3, 1))
    x = _cbl_reference(x, params["w1"], params["g1"], params["be1"], s=1)
    x = _cbl_reference(x, params["w2"], params["g2"], params["be2"], s=2)
    return jnp.transpose(x, (0, 3, 1, 2))


def init_focus_params(key, c1, c2):
    """Deterministic synthetic parameters matching PyTorch shapes.
    Conv biases are intentionally omitted: a bias immediately followed by
    train-mode BatchNorm is cancelled exactly by the mean subtraction."""
    ks = jax.random.split(key, 6)
    c3 = 2 * c2
    return {
        "w1": 0.1 * jax.random.normal(ks[0], (c2, c1, 3, 3), jnp.float32),
        "g1": 1.0 + 0.1 * jax.random.normal(ks[1], (c2,), jnp.float32),
        "be1": 0.1 * jax.random.normal(ks[2], (c2,), jnp.float32),
        "w2": 0.1 * jax.random.normal(ks[3], (c3, c2, 3, 3), jnp.float32),
        "g2": 1.0 + 0.1 * jax.random.normal(ks[4], (c3,), jnp.float32),
        "be2": 0.1 * jax.random.normal(ks[5], (c3,), jnp.float32),
    }


if __name__ == "__main__":
    key = jax.random.PRNGKey(0)
    k_x, k_p = jax.random.split(key)

    # Small shapes consistent with the module: N=2, c1=4, c2=8, spatial=16.
    N, C1, C2, H, W = 2, 4, 8, 16, 16
    x = jax.random.normal(k_x, (N, C1, H, W), jnp.float32)
    params = init_focus_params(k_p, C1, C2)

    out = jax.block_until_ready(jax.jit(focus_forward)(x, params))

    # Expected output shape: (N, 2*c2, H//2, W//2) = (2, 16, 8, 8)
    assert out.shape == (N, 2 * C2, H // 2, W // 2), out.shape
    assert out.dtype == jnp.float32
    assert bool(jnp.all(jnp.isfinite(out)))

    # Correctness vs pure-JAX f32 reference (bf16 matmul => loose tolerance).
    ref = jax.block_until_ready(jax.jit(focus_reference)(x, params))
    err = float(jnp.max(jnp.abs(out - ref)))
    assert err < 0.15, f"max abs error vs reference: {err}"

    print("KERNEL_OK")
</pallas_src>

<mosaic_0001>
module attributes {stable_mosaic.version = 11 : i64} {
  func.func @_conv_stats_kernel(%arg0: i32, %arg1: memref<512x36xbf16, #tpu.memory_space<vmem>>, %arg2: memref<36x8xbf16, #tpu.memory_space<vmem>>, %arg3: memref<512x8xbf16, #tpu.memory_space<vmem>>, %arg4: memref<1x1x8xf32, #tpu.memory_space<vmem>>, %arg5: memref<1x1x8xf32, #tpu.memory_space<vmem>>) attributes {dimension_semantics = [#tpu.dimension_semantics<parallel>], iteration_bounds = array<i64: 1>, scalar_prefetch = 0 : i64, scratch_operands = 0 : i64, tpu.core_type = #tpu.core_type<tc>, window_params = [{transform_indices = @transform_0, window_bounds = array<i64: 512, 36>}, {pipeline_mode = #tpu.pipeline_mode<synchronous>, transform_indices = @transform_1, window_bounds = array<i64: 36, 8>}, {transform_indices = @transform_2, window_bounds = array<i64: 512, 8>}, {transform_indices = @transform_3, window_bounds = array<i64: 1, 1, 8>}, {transform_indices = @transform_4, window_bounds = array<i64: 1, 1, 8>}]} {
    %c0 = arith.constant 0 : index
    %c0_0 = arith.constant 0 : index
    %0 = vector.load %arg1[%c0, %c0_0] : memref<512x36xbf16, #tpu.memory_space<vmem>>, vector<512x36xbf16>
    %c0_1 = arith.constant 0 : index
    %c0_2 = arith.constant 0 : index
    %1 = vector.load %arg2[%c0_1, %c0_2] : memref<36x8xbf16, #tpu.memory_space<vmem>>, vector<36x8xbf16>
    %cst = arith.constant dense<0.000000e+00> : vector<512x8xf32>
    %2 = tpu.matmul %0, %1, %cst {dimension_numbers = #tpu.dot_dimension_numbers<[1], [0], [0], [1], [0, 0, 1, 1], [], []>} : vector<512x36xbf16>, vector<36x8xbf16>, vector<512x8xf32> -> vector<512x8xf32>
    %3 = arith.truncf %2 : vector<512x8xf32> to vector<512x8xbf16>
    %c0_3 = arith.constant 0 : index
    %c0_4 = arith.constant 0 : index
    %4 = vector.load %arg3[%c0_3, %c0_4] : memref<512x8xbf16, #tpu.memory_space<vmem>>, vector<512x8xbf16>
    tpu.vector_store %arg3[%c0_3, %c0_4], %3 {strides = array<i32>} : memref<512x8xbf16, #tpu.memory_space<vmem>>, vector<512x8xbf16>,
    %cst_5 = arith.constant dense<0.000000e+00> : vector<8xf32>
    %5 = vector.multi_reduction <add>, %2, %cst_5 [0] : vector<512x8xf32> to vector<8xf32>
    %6 = vector.shape_cast %5 : vector<8xf32> to vector<1x8xf32>
    %7 = vector.shape_cast %6 : vector<1x8xf32> to vector<1x1x8xf32>
    %c0_6 = arith.constant 0 : index
    %c0_7 = arith.constant 0 : index
    %c0_8 = arith.constant 0 : index
    %8 = vector.load %arg4[%c0_6, %c0_7, %c0_8] : memref<1x1x8xf32, #tpu.memory_space<vmem>>, vector<1x1x8xf32>
    tpu.vector_store %arg4[%c0_6, %c0_7, %c0_8], %7 {strides = array<i32>} : memref<1x1x8xf32, #tpu.memory_space<vmem>>, vector<1x1x8xf32>,
    %9 = arith.mulf %2, %2 : vector<512x8xf32>
    %cst_9 = arith.constant dense<0.000000e+00> : vector<8xf32>
    %10 = vector.multi_reduction <add>, %9, %cst_9 [0] : vector<512x8xf32> to vector<8xf32>
    %11 = vector.shape_cast %10 : vector<8xf32> to vector<1x8xf32>
    %12 = vector.shape_cast %11 : vector<1x8xf32> to vector<1x1x8xf32>
    %c0_10 = arith.constant 0 : index
    %c0_11 = arith.constant 0 : index
    %c0_12 = arith.constant 0 : index
    %13 = vector.load %arg5[%c0_10, %c0_11, %c0_12] : memref<1x1x8xf32, #tpu.memory_space<vmem>>, vector<1x1x8xf32>
    tpu.vector_store %arg5[%c0_10, %c0_11, %c0_12], %12 {strides = array<i32>} : memref<1x1x8xf32, #tpu.memory_space<vmem>>, vector<1x1x8xf32>,
    return
  }
  func.func @transform_0(%arg0: i32) -> (i32, i32) {
    %c0_i32 = arith.constant 0 : i32
    %c0_i32_0 = arith.constant 0 : i32
    return %arg0, %c0_i32 : i32, i32
  }
  func.func @transform_1(%arg0: i32) -> (i32, i32) {
    %c0_i32 = arith.constant 0 : i32
    %c0_i32_0 = arith.constant 0 : i32
    %c0_i32_1 = arith.constant 0 : i32
    return %c0_i32, %c0_i32_0 : i32, i32
  }
  func.func @transform_2(%arg0: i32) -> (i32, i32) {
    %c0_i32 = arith.constant 0 : i32
    %c0_i32_0 = arith.constant 0 : i32
    return %arg0, %c0_i32 : i32, i32
  }
  func.func @transform_3(%arg0: i32) -> (i32, i32, i32) {
    %c0_i32 = arith.constant 0 : i32
    %c0_i32_0 = arith.constant 0 : i32
    %c0_i32_1 = arith.constant 0 : i32
    return %arg0, %c0_i32, %c0_i32_0 : i32, i32, i32
  }
  func.func @transform_4(%arg0: i32) -> (i32, i32, i32) {
    %c0_i32 = arith.constant 0 : i32
    %c0_i32_0 = arith.constant 0 : i32
    %c0_i32_1 = arith.constant 0 : i32
    return %arg0, %c0_i32, %c0_i32_0 : i32, i32, i32
  }
}

module attributes {stable_mosaic.version = 11 : i64} {
  func.func @_bn_lrelu_kernel(%arg0: i32, %arg1: memref<32x128xbf16, #tpu.memory_space<vmem>>, %arg2: memref<1x128xf32, #tpu.memory_space<vmem>>, %arg3: memref<1x128xf32, #tpu.memory_space<vmem>>, %arg4: memref<32x128xbf16, #tpu.memory_space<vmem>>) attributes {dimension_semantics = [#tpu.dimension_semantics<parallel>], iteration_bounds = array<i64: 1>, scalar_prefetch = 0 : i64, scratch_operands = 0 : i64, tpu.core_type = #tpu.core_type<tc>, window_params = [{transform_indices = @transform_0, window_bounds = array<i64: 32, 128>}, {pipeline_mode = #tpu.pipeline_mode<synchronous>, transform_indices = @transform_1, window_bounds = array<i64: 1, 128>}, {pipeline_mode = #tpu.pipeline_mode<synchronous>, transform_indices = @transform_2, window_bounds = array<i64: 1, 128>}, {transform_indices = @transform_3, window_bounds = array<i64: 32, 128>}]} {
    %c0 = arith.constant 0 : index
    %c0_0 = arith.constant 0 : index
    %0 = vector.load %arg1[%c0, %c0_0] : memref<32x128xbf16, #tpu.memory_space<vmem>>, vector<32x128xbf16>
    %1 = arith.extf %0 : vector<32x128xbf16> to vector<32x128xf32>
    %c0_1 = arith.constant 0 : index
    %c0_2 = arith.constant 0 : index
    %2 = vector.load %arg2[%c0_1, %c0_2] : memref<1x128xf32, #tpu.memory_space<vmem>>, vector<1x128xf32>
    %3 = vector.broadcast %2 : vector<1x128xf32> to vector<32x128xf32>
    %4 = arith.mulf %1, %3 : vector<32x128xf32>
    %c0_3 = arith.constant 0 : index
    %c0_4 = arith.constant 0 : index
    %5 = vector.load %arg3[%c0_3, %c0_4] : memref<1x128xf32, #tpu.memory_space<vmem>>, vector<1x128xf32>
    %6 = vector.broadcast %5 : vector<1x128xf32> to vector<32x128xf32>
    %7 = arith.addf %4, %6 : vector<32x128xf32>
    %cst = arith.constant 0.000000e+00 : f32
    %8 = vector.broadcast %cst : f32 to vector<32x128xf32>
    %9 = arith.cmpf oge, %7, %8 : vector<32x128xf32>
    %cst_5 = arith.constant 0.00999999977 : f32
    %10 = vector.broadcast %cst_5 : f32 to vector<32x128xf32>
    %11 = arith.mulf %10, %7 : vector<32x128xf32>
    %12 = arith.select %9, %7, %11 : vector<32x128xi1>, vector<32x128xf32>
    %13 = arith.truncf %12 : vector<32x128xf32> to vector<32x128xbf16>
    %c0_6 = arith.constant 0 : index
    %c0_7 = arith.constant 0 : index
    %14 = vector.load %arg4[%c0_6, %c0_7] : memref<32x128xbf16, #tpu.memory_space<vmem>>, vector<32x128xbf16>
    tpu.vector_store %arg4[%c0_6, %c0_7], %13 {strides = array<i32>} : memref<32x128xbf16, #tpu.memory_space<vmem>>, vector<32x128xbf16>,
    return
  }
  func.func @transform_0(%arg0: i32) -> (i32, i32) {
    %c0_i32 = arith.constant 0 : i32
    %c0_i32_0 = arith.constant 0 : i32
    return %arg0, %c0_i32 : i32, i32
  }
  func.func @transform_1(%arg0: i32) -> (i32, i32) {
    %c0_i32 = arith.constant 0 : i32
    %c0_i32_0 = arith.constant 0 : i32
    %c0_i32_1 = arith.constant 0 : i32
    return %c0_i32, %c0_i32_0 : i32, i32
  }
  func.func @transform_2(%arg0: i32) -> (i32, i32) {
    %c0_i32 = arith.constant 0 : i32
    %c0_i32_0 = arith.constant 0 : i32
    %c0_i32_1 = arith.constant 0 : i32
    return %c0_i32, %c0_i32_0 : i32, i32
  }
  func.func @transform_3(%arg0: i32) -> (i32, i32) {
    %c0_i32 = arith.constant 0 : i32
    %c0_i32_0 = arith.constant 0 : i32
    return %arg0, %c0_i32 : i32, i32
  }
}

module attributes {stable_mosaic.version = 11 : i64} {
  func.func @_conv_stats_kernel(%arg0: i32, %arg1: memref<128x72xbf16, #tpu.memory_space<vmem>>, %arg2: memref<72x16xbf16, #tpu.memory_space<vmem>>, %arg3: memref<128x16xbf16, #tpu.memory_space<vmem>>, %arg4: memref<1x1x16xf32, #tpu.memory_space<vmem>>, %arg5: memref<1x1x16xf32, #tpu.memory_space<vmem>>) attributes {dimension_semantics = [#tpu.dimension_semantics<parallel>], iteration_bounds = array<i64: 1>, scalar_prefetch = 0 : i64, scratch_operands = 0 : i64, tpu.core_type = #tpu.core_type<tc>, window_params = [{transform_indices = @transform_0, window_bounds = array<i64: 128, 72>}, {pipeline_mode = #tpu.pipeline_mode<synchronous>, transform_indices = @transform_1, window_bounds = array<i64: 72, 16>}, {transform_indices = @transform_2, window_bounds = array<i64: 128, 16>}, {transform_indices = @transform_3, window_bounds = array<i64: 1, 1, 16>}, {transform_indices = @transform_4, window_bounds = array<i64: 1, 1, 16>}]} {
    %c0 = arith.constant 0 : index
    %c0_0 = arith.constant 0 : index
    %0 = vector.load %arg1[%c0, %c0_0] : memref<128x72xbf16, #tpu.memory_space<vmem>>, vector<128x72xbf16>
    %c0_1 = arith.constant 0 : index
    %c0_2 = arith.constant 0 : index
    %1 = vector.load %arg2[%c0_1, %c0_2] : memref<72x16xbf16, #tpu.memory_space<vmem>>, vector<72x16xbf16>
    %cst = arith.constant dense<0.000000e+00> : vector<128x16xf32>
    %2 = tpu.matmul %0, %1, %cst {dimension_numbers = #tpu.dot_dimension_numbers<[1], [0], [0], [1], [0, 0, 1, 1], [], []>} : vector<128x72xbf16>, vector<72x16xbf16>, vector<128x16xf32> -> vector<128x16xf32>
    %3 = arith.truncf %2 : vector<128x16xf32> to vector<128x16xbf16>
    %c0_3 = arith.constant 0 : index
    %c0_4 = arith.constant 0 : index
    %4 = vector.load %arg3[%c0_3, %c0_4] : memref<128x16xbf16, #tpu.memory_space<vmem>>, vector<128x16xbf16>
    tpu.vector_store %arg3[%c0_3, %c0_4], %3 {strides = array<i32>} : memref<128x16xbf16, #tpu.memory_space<vmem>>, vector<128x16xbf16>,
    %cst_5 = arith.constant dense<0.000000e+00> : vector<16xf32>
    %5 = vector.multi_reduction <add>, %2, %cst_5 [0] : vector<128x16xf32> to vector<16xf32>
    %6 = vector.shape_cast %5 : vector<16xf32> to vector<1x16xf32>
    %7 = vector.shape_cast %6 : vector<1x16xf32> to vector<1x1x16xf32>
    %c0_6 = arith.constant 0 : index
    %c0_7 = arith.constant 0 : index
    %c0_8 = arith.constant 0 : index
    %8 = vector.load %arg4[%c0_6, %c0_7, %c0_8] : memref<1x1x16xf32, #tpu.memory_space<vmem>>, vector<1x1x16xf32>
    tpu.vector_store %arg4[%c0_6, %c0_7, %c0_8], %7 {strides = array<i32>} : memref<1x1x16xf32, #tpu.memory_space<vmem>>, vector<1x1x16xf32>,
    %9 = arith.mulf %2, %2 : vector<128x16xf32>
    %cst_9 = arith.constant dense<0.000000e+00> : vector<16xf32>
    %10 = vector.multi_reduction <add>, %9, %cst_9 [0] : vector<128x16xf32> to vector<16xf32>
    %11 = vector.shape_cast %10 : vector<16xf32> to vector<1x16xf32>
    %12 = vector.shape_cast %11 : vector<1x16xf32> to vector<1x1x16xf32>
    %c0_10 = arith.constant 0 : index
    %c0_11 = arith.constant 0 : index
    %c0_12 = arith.constant 0 : index
    %13 = vector.load %arg5[%c0_10, %c0_11, %c0_12] : memref<1x1x16xf32, #tpu.memory_space<vmem>>, vector<1x1x16xf32>
    tpu.vector_store %arg5[%c0_10, %c0_11, %c0_12], %12 {strides = array<i32>} : memref<1x1x16xf32, #tpu.memory_space<vmem>>, vector<1x1x16xf32>,
    return
  }
  func.func @transform_0(%arg0: i32) -> (i32, i32) {
    %c0_i32 = arith.constant 0 : i32
    %c0_i32_0 = arith.constant 0 : i32
    return %arg0, %c0_i32 : i32, i32
  }
  func.func @transform_1(%arg0: i32) -> (i32, i32) {
    %c0_i32 = arith.constant 0 : i32
    %c0_i32_0 = arith.constant 0 : i32
    %c0_i32_1 = arith.constant 0 : i32
    return %c0_i32, %c0_i32_0 : i32, i32
  }
  func.func @transform_2(%arg0: i32) -> (i32, i32) {
    %c0_i32 = arith.constant 0 : i32
    %c0_i32_0 = arith.constant 0 : i32
    return %arg0, %c0_i32 : i32, i32
  }
  func.func @transform_3(%arg0: i32) -> (i32, i32, i32) {
    %c0_i32 = arith.constant 0 : i32
    %c0_i32_0 = arith.constant 0 : i32
    %c0_i32_1 = arith.constant 0 : i32
    return %arg0, %c0_i32, %c0_i32_0 : i32, i32, i32
  }
  func.func @transform_4(%arg0: i32) -> (i32, i32, i32) {
    %c0_i32 = arith.constant 0 : i32
    %c0_i32_0 = arith.constant 0 : i32
    %c0_i32_1 = arith.constant 0 : i32
    return %arg0, %c0_i32, %c0_i32_0 : i32, i32, i32
  }
}

module attributes {stable_mosaic.version = 11 : i64} {
  func.func @_bn_lrelu_kernel(%arg0: i32, %arg1: memref<16x128xbf16, #tpu.memory_space<vmem>>, %arg2: memref<1x128xf32, #tpu.memory_space<vmem>>, %arg3: memref<1x128xf32, #tpu.memory_space<vmem>>, %arg4: memref<16x128xf32, #tpu.memory_space<vmem>>) attributes {dimension_semantics = [#tpu.dimension_semantics<parallel>], iteration_bounds = array<i64: 1>, scalar_prefetch = 0 : i64, scratch_operands = 0 : i64, tpu.core_type = #tpu.core_type<tc>, window_params = [{transform_indices = @transform_0, window_bounds = array<i64: 16, 128>}, {pipeline_mode = #tpu.pipeline_mode<synchronous>, transform_indices = @transform_1, window_bounds = array<i64: 1, 128>}, {pipeline_mode = #tpu.pipeline_mode<synchronous>, transform_indices = @transform_2, window_bounds = array<i64: 1, 128>}, {transform_indices = @transform_3, window_bounds = array<i64: 16, 128>}]} {
    %c0 = arith.constant 0 : index
    %c0_0 = arith.constant 0 : index
    %0 = vector.load %arg1[%c0, %c0_0] : memref<16x128xbf16, #tpu.memory_space<vmem>>, vector<16x128xbf16>
    %1 = arith.extf %0 : vector<16x128xbf16> to vector<16x128xf32>
    %c0_1 = arith.constant 0 : index
    %c0_2 = arith.constant 0 : index
    %2 = vector.load %arg2[%c0_1, %c0_2] : memref<1x128xf32, #tpu.memory_space<vmem>>, vector<1x128xf32>
    %3 = vector.broadcast %2 : vector<1x128xf32> to vector<16x128xf32>
    %4 = arith.mulf %1, %3 : vector<16x128xf32>
    %c0_3 = arith.constant 0 : index
    %c0_4 = arith.constant 0 : index
    %5 = vector.load %arg3[%c0_3, %c0_4] : memref<1x128xf32, #tpu.memory_space<vmem>>, vector<1x128xf32>
    %6 = vector.broadcast %5 : vector<1x128xf32> to vector<16x128xf32>
    %7 = arith.addf %4, %6 : vector<16x128xf32>
    %cst = arith.constant 0.000000e+00 : f32
    %8 = vector.broadcast %cst : f32 to vector<16x128xf32>
    %9 = arith.cmpf oge, %7, %8 : vector<16x128xf32>
    %cst_5 = arith.constant 0.00999999977 : f32
    %10 = vector.broadcast %cst_5 : f32 to vector<16x128xf32>
    %11 = arith.mulf %10, %7 : vector<16x128xf32>
    %12 = arith.select %9, %7, %11 : vector<16x128xi1>, vector<16x128xf32>
    %c0_6 = arith.constant 0 : index
    %c0_7 = arith.constant 0 : index
    %13 = vector.load %arg4[%c0_6, %c0_7] : memref<16x128xf32, #tpu.memory_space<vmem>>, vector<16x128xf32>
    tpu.vector_store %arg4[%c0_6, %c0_7], %12 {strides = array<i32>} : memref<16x128xf32, #tpu.memory_space<vmem>>, vector<16x128xf32>,
    return
  }
  func.func @transform_0(%arg0: i32) -> (i32, i32) {
    %c0_i32 = arith.constant 0 : i32
    %c0_i32_0 = arith.constant 0 : i32
    return %arg0, %c0_i32 : i32, i32
  }
  func.func @transform_1(%arg0: i32) -> (i32, i32) {
    %c0_i32 = arith.constant 0 : i32
    %c0_i32_0 = arith.constant 0 : i32
    %c0_i32_1 = arith.constant 0 : i32
    return %c0_i32, %c0_i32_0 : i32, i32
  }
  func.func @transform_2(%arg0: i32) -> (i32, i32) {
    %c0_i32 = arith.constant 0 : i32
    %c0_i32_0 = arith.constant 0 : i32
    %c0_i32_1 = arith.constant 0 : i32
    return %c0_i32, %c0_i32_0 : i32, i32
  }
  func.func @transform_3(%arg0: i32) -> (i32, i32) {
    %c0_i32 = arith.constant 0 : i32
    %c0_i32_0 = arith.constant 0 : i32
    return %arg0, %c0_i32 : i32, i32
  }
}

</mosaic_0001>

<bundles_post_ra>
// kernel: tile.23
= control target key start
LH: loop header
LB: loop body
LE: loop exit
PB: predicated region body
PF: predicated region fallthrough
CT: control target
= control target key end

     0   :  { %s28_s0 = inlined_call_operand.vmem [shape: f32[8], index: 0, kind: input, shape index: {}]   ;;  %s29_s1 = inlined_call_operand.vmem [shape: f32[16,8], index: 1, kind: output, shape index: {}]  }
   0x1   :  { %v4_v0 = vld [vmem:[%s28_s0] ss:$0 sm:$0xff] }
   0x2   :  { %5 = vst [vmem:[%s29_s1] sm:$0xff] %v4_v0 }
   0x3   :  { %8 = vst [vmem:[%s29_s1 + $0x8] sm:$0xff] %v4_v0 }

// kernel: tile.24
= control target key start
LH: loop header
LB: loop body
LE: loop exit
PB: predicated region body
PF: predicated region fallthrough
CT: control target
= control target key end

     0   :  { %s131_s10 = smov 120   ;;  %s132_s11 = smov 104   ;;  %vm3_vm0 = vcmask 64512   ;;  %vm9_vm1 = vcmask 1048512   ;;  %vm15_vm2 = vcmask 982912   ;;  %vm21_vm3 = vcmask 917312   ;;  %s207_s0 = inlined_call_operand.vmem [shape: f32[16,8], index: 0, kind: input, shape index: {}]   ;;  %s208_s1 = inlined_call_operand.vmem [shape: f32[1,128], index: 1, kind: output, shape index: {}]  }
   0x1   :  { %v101_v0 = vld [vmem:[%s207_s0 + $0xf] sm:$0x1]   ;;  %v103_v1 = vld [vmem:[%s207_s0 + $0xd] sm:$0x1]   ;;  %v105_v2 = vld [vmem:[%s207_s0 + $0xb] sm:$0x1]  }
   0x2   :  { %7 = vrot.lane.b32.xlu0 %v101_v0, %s131_s10  ;;  %19 = vrot.lane.b32.xlu1 %v103_v1, %s132_s11  ;;  %s133_s14 = smov 88   ;;  %v102_v3 = vld [vmem:[%s207_s0 + $0xe] sm:$0x1]   ;;  %v104_v4 = vld [vmem:[%s207_s0 + $0xc] sm:$0x1]   ;;  %s134_s19 = smov 112  }
   0x3   :  { %31 = vrot.lane.b32.xlu2 %v105_v2, %s133_s14  ;;  %s135_s20 = smov 96   ;;  %v106_v5 = vld [vmem:[%s207_s0 + $0xa] sm:$0x1]   ;;  %s136_s23 = smov 80   ;;  %v107_v6 = vld [vmem:[%s207_s0 + $0x9] sm:$0x1]  }
   0x4   :  { %v108_v7 = vld [vmem:[%s207_s0 + $0x8] sm:$0x1]   ;;  %s137_s28 = smov 72   ;;  %s138_s29 = smov 64   ;;  %v109_v8 = vld [vmem:[%s207_s0 + $0x7] sm:$0x1]  }
   0x5   :  { %s139_s3 = smov 56   ;;  %v110_v9 = vld [vmem:[%s207_s0 + $0x6] sm:$0x1]   ;;  %v111_v10 = vld [vmem:[%s207_s0 + $0x5] sm:$0x1]   ;;  %s140_s8 = smov 48  }
   0x6   :  { %s141_s9 = smov 40   ;;  %v112_v11 = vld [vmem:[%s207_s0 + $0x4] sm:$0x1]   ;;  %s142_s12 = smov 32   ;;  %v113_v12 = vld [vmem:[%s207_s0 + $0x3] sm:$0x1]  }
   0x7   :  { %v114_v13 = vld [vmem:[%s207_s0 + $0x2] sm:$0x1]   ;;  %s143_s17 = smov 24   ;;  %s144_s18 = smov 16   ;;  %v115_v14 = vld [vmem:[%s207_s0 + $0x1] sm:$0x1]  }
   0x8   :  { %s145_s21 = smov 8   ;;  %v2_v15 = vld [vmem:[%s207_s0] sm:$0x1]   ;;  %vm27_vm4 = vcmask 851712   ;;  %vm33_vm5 = vcmask 786112   ;;  %vm39_vm6 = vcmask 720512  }
   0x9   :  { %4 = vst.msk [vmem:[#allocation0] sm:$0x1] %vm3_vm0, %v2_v15   ;;  %vm45_vm7 = vcmask 654912   ;;  %vm51_vm8 = vcmask 589312   ;;  %vm57_vm9 = vcmask 523712   ;;  %vm63_vm10 = vcmask 458112  }
   0xa   :  { %13 = vrot.lane.b32.xlu0 %v102_v3, %s134_s19  ;;  %25 = vrot.lane.b32.xlu1 %v104_v4, %s135_s20  ;;  %vm69_vm11 = vcmask 392512   ;;  %vm75_vm12 = vcmask 326912   ;;  %vm81_vm13 = vcmask 261312   ;;  %vm87_vm14 = vcmask 195712  }
   0xb   :  { %37 = vrot.lane.b32.xlu2 %v106_v5, %s136_s23  ;;  %vm93_vm15 = vcmask 130112  }
  0x12   :  { %43 = vrot.lane.b32.xlu0 %v107_v6, %s137_s28  ;;  %49 = vrot.lane.b32.xlu1 %v108_v7, %s138_s29 }
  0x13   :  { %55 = vrot.lane.b32.xlu2 %v109_v8, %s139_s3 }
  0x1a   :  { %61 = vrot.lane.b32.xlu0 %v110_v9, %s140_s8  ;;  %67 = vrot.lane.b32.xlu1 %v111_v10, %s141_s9 }
  0x1b   :  { %73 = vrot.lane.b32.xlu2 %v112_v11, %s142_s12 }
  0x22   :  { %79 = vrot.lane.b32.xlu0 %v113_v12, %s143_s17  ;;  %85 = vrot.lane.b32.xlu1 %v114_v13, %s144_s18 }
  0x23   :  { %91 = vrot.lane.b32.xlu2 %v115_v14, %s145_s21 }
  0x5d   :  { %v32_v16 = vpop.permute.xlu2 %31  }
  0x65   :  { %v38_v17 = vpop.permute.xlu2 %37  }
  0x6d   :  { %v56_v18 = vpop.permute.xlu2 %55  }
  0x74   :  { %v8_v19 = vpop.permute.xlu0 %7   ;;  %v20_v20 = vpop.permute.xlu1 %19  }
  0x75   :  { %10 = vst.msk [vmem:[#allocation0] sm:$0x1] %vm9_vm1, %v8_v19   ;;  %v74_v21 = vpop.permute.xlu2 %73  }
  0x7c   :  { %v14_v22 = vpop.permute.xlu0 %13   ;;  %v26_v23 = vpop.permute.xlu1 %25  }
  0x7d   :  { %16 = vst.msk [vmem:[#allocation0] sm:$0x1] %vm15_vm2, %v14_v22   ;;  %v92_v24 = vpop.permute.xlu2 %91  }
  0x7e   :  { %22 = vst.msk [vmem:[#allocation0] sm:$0x1] %vm21_vm3, %v20_v20  }
  0x7f   :  { %28 = vst.msk [vmem:[#allocation0] sm:$0x1] %vm27_vm4, %v26_v23  }
  0x80   :  { %34 = vst.msk [vmem:[#allocation0] sm:$0x1] %vm33_vm5, %v32_v16  }
  0x81   :  { %40 = vst.msk [vmem:[#allocation0] sm:$0x1] %vm39_vm6, %v38_v17  }
  0x84   :  { %v44_v25 = vpop.permute.xlu0 %43   ;;  %v50_v26 = vpop.permute.xlu1 %49  }
  0x85   :  { %46 = vst.msk [vmem:[#allocation0] sm:$0x1] %vm45_vm7, %v44_v25  }
  0x86   :  { %52 = vst.msk [vmem:[#allocation0] sm:$0x1] %vm51_vm8, %v50_v26  }
  0x87   :  { %58 = vst.msk [vmem:[#allocation0] sm:$0x1] %vm57_vm9, %v56_v18  }
  0x8c   :  { %v62_v27 = vpop.permute.xlu0 %61   ;;  %v68_v28 = vpop.permute.xlu1 %67  }
  0x8d   :  { %64 = vst.msk [vmem:[#allocation0] sm:$0x1] %vm63_vm10, %v62_v27  }
  0x8e   :  { %70 = vst.msk [vmem:[#allocation0] sm:$0x1] %vm69_vm11, %v68_v28  }
  0x8f   :  { %76 = vst.msk [vmem:[#allocation0] sm:$0x1] %vm75_vm12, %v74_v21  }
  0x94   :  { %v80_v29 = vpop.permute.xlu0 %79   ;;  %v86_v30 = vpop.permute.xlu1 %85  }
  0x95   :  { %82 = vst.msk [vmem:[#allocation0] sm:$0x1] %vm81_vm13, %v80_v29  }
  0x96   :  { %88 = vst.msk [vmem:[#allocation0] sm:$0x1] %vm87_vm14, %v86_v30  }
  0x97   :  { %94 = vst.msk [vmem:[#allocation0] sm:$0x1] %vm93_vm15, %v92_v24  }
  0x9e   :  { %v97_v31 = vld [vmem:[#allocation0] sm:$0x1] }
  0x9f   :  { %100 = vst [vmem:[%s208_s1] sm:$0x1] %v97_v31 }

// kernel: focus_forward.5
= control target key start
LH: loop header
LB: loop body
LE: loop exit
PB: predicated region body
PF: predicated region fallthrough
CT: control target
= control target key end

     0   :  { %s122_s0 = inlined_call_operand.vmem [shape: bf16[32,128], index: 0, kind: input, shape index: {}]   ;;  %s123_s1 = inlined_call_operand.vmem [shape: f32[1,128], index: 1, kind: input, shape index: {}]   ;;  %s124_s2 = inlined_call_operand.vmem [shape: f32[1,128], index: 2, kind: input, shape index: {}]   ;;  %s125_s3 = inlined_call_operand.vmem [shape: bf16[32,128], index: 3, kind: output, shape index: {}]  }
   0x1   :  { %v63_v0 = vld [vmem:[%s122_s0] sm:$0xff]   ;;  %v80_v5 = vld [vmem:[%s122_s0 + $0x8] sm:$0xff]  }
   0x2   :  { %v82_v1 = vld [vmem:[%s123_s1] ss:$0 sm:$0xff]  ;;  %v64_v2 = vunpack.c.l.bf16 %v63_v0  ;;  %v65_v3 = vunpack.c.h.bf16 %v63_v0  ;;  %v68_v6 = vunpack.c.l.bf16 %v80_v5  ;;  %v69_v7 = vunpack.c.h.bf16 %v80_v5 }
   0x3   :  { %v83_v4 = vld [vmem:[%s124_s2] ss:$0 sm:$0xff] }
   0x4   :  { %v26_v8 = vmul.f32 %v82_v1, %v64_v2  ;;  %v27_v9 = vmul.f32 %v82_v1, %v65_v3  ;;  %v28_v10 = vmul.f32 %v82_v1, %v68_v6  ;;  %v29_v11 = vmul.f32 %v82_v1, %v69_v7 }
   0x6   :  { %v34_v12 = vadd.f32 %v83_v4, %v26_v8  ;;  %v35_v13 = vadd.f32 %v83_v4, %v27_v9  ;;  %v36_v14 = vadd.f32 %v83_v4, %v28_v10  ;;  %v37_v15 = vadd.f32 %v83_v4, %v29_v11 }
   0x8   :  { %vm38_vm0 = vcmp.ge.f32.partialorder %v34_v12, 0.0  ;;  %vm39_vm1 = vcmp.ge.f32.partialorder %v35_v13, 0.0  ;;  %v42_v16 = vmul.f32 0.01, %v34_v12  ;;  %v43_v17 = vmul.f32 0.01, %v35_v13 }
   0x9   :  { %vm40_vm2 = vcmp.ge.f32.partialorder %v36_v14, 0.0  ;;  %vm41_vm3 = vcmp.ge.f32.partialorder %v37_v15, 0.0  ;;  %v44_v18 = vmul.f32 0.01, %v36_v14  ;;  %v45_v19 = vmul.f32 0.01, %v37_v15 }
   0xa   :  { %v46_v20 = vsel %vm38_vm0, %v34_v12, %v42_v16  ;;  %v47_v21 = vsel %vm39_vm1, %v35_v13, %v43_v17 }
   0xb   :  { %v73_v22 = vpack.c.bf16 %v47_v21, %v46_v20  ;;  %v48_v23 = vsel %vm40_vm2, %v36_v14, %v44_v18  ;;  %v49_v24 = vsel %vm41_vm3, %v37_v15, %v45_v19 }
   0xc   :  { %v78_v25 = vpack.c.bf16 %v49_v24, %v48_v23 }
   0xd   :  { %74 = vst [vmem:[%s125_s3] sm:$0xff] %v73_v22  }
   0xe   :  { %81 = vst [vmem:[%s125_s3 + $0x8] sm:$0xff] %v78_v25  }

// kernel: focus_forward.4
= control target key start
LH: loop header
LB: loop body
LE: loop exit
PB: predicated region body
PF: predicated region fallthrough
CT: control target
= control target key end

     0   :  { %vm356_vm0 = vcmask 1041408   ;;  %vm259_vm1 = vcmask 293888   ;;  %vm593_vm2 = vcmask 60416   ;;  %vm658_vm3 = vcmask 64512   ;;  %s2151_s1 = inlined_call_operand.vmem [shape: bf16[36,8], index: 1, kind: input, shape index: {}]   ;;  %s2152_s0 = inlined_call_operand.vmem [shape: bf16[512,36], index: 0, kind: input, shape index: {}]   ;;  %s2153_s2 = inlined_call_operand.vmem [shape: bf16[512,8], index: 2, kind: output, shape index: {0}]   ;;  %s2154_s3 = inlined_call_operand.vmem [shape: f32[1,1,8], index: 3, kind: output, shape index: {1}]   ;;  %s2155_s4 = inlined_call_operand.vmem [shape: f32[1,1,8], index: 4, kind: output, shape index: {2}]  }
   0x1   :  { %v83_v0 = vld [vmem:[%s2151_s1 + $0x10] sm:$0x3]  ;;  %v1205_v4 = vld [vmem:[%s2151_s1 + $0x8] sm:$0xff]  ;;  %v1204_v5 = vld [vmem:[%s2151_s1] sm:$0xff]  ;;  %vm792_vm4 = vcmask 57344  }
   0x2   :  { %v253_v1 = vunpack.c.l.b16 %v83_v0  ;;  %v1172_v6 = vld [vmem:[%s2152_s0] sm:$0xff]  ;;  %v1173_v8 = vld [vmem:[%s2152_s0 + $0x8] sm:$0xff]  ;;  %v1174_v11 = vld [vmem:[%s2152_s0 + $0x10] sm:$0xff] }
   0x3   :  { %v1180_v7 = vld [vmem:[%s2152_s0 + $0x40] sm:$0xff]  ;;  %v1181_v9 = vld [vmem:[%s2152_s0 + $0x48] sm:$0xff]  ;;  %v1182_v12 = vld [vmem:[%s2152_s0 + $0x50] sm:$0xff] }
   0x4   :  { %v256_v2 = vpack.c.b16 %v253_v1, %v253_v1  ;;  %v1188_v10 = vld [vmem:[%s2152_s0 + $0x80] sm:$0xff]  ;;  %v1189_v13 = vld [vmem:[%s2152_s0 + $0x88] sm:$0xff]  ;;  %v1175_v14 = vld [vmem:[%s2152_s0 + $0x18] sm:$0xff] }
   0x5   :  { %v1183_v15 = vld [vmem:[%s2152_s0 + $0x58] sm:$0xff]  ;;  %v1190_v16 = vld [vmem:[%s2152_s0 + $0x90] sm:$0xff]  ;;  %v1196_v17 = vld [vmem:[%s2152_s0 + $0xc0] sm:$0xff] }
   0x6   :  { %v358_v3 = vsel %vm356_vm0, %v256_v2, 0  ;;  %v1176_v18 = vld [vmem:[%s2152_s0 + $0x20] sm:$0xff]  ;;  %v1191_v20 = vld [vmem:[%s2152_s0 + $0x98] sm:$0xff]  ;;  %v1197_v21 = vld [vmem:[%s2152_s0 + $0xc8] sm:$0xff] }
   0x7   :  { %365 = vmatpush.bf16.msra.mxu0 %v358_v3  ;;  %1206 = vmatpush.bf16.msra.mxu1 %v358_v3  ;;  %v1184_v19 = vld [vmem:[%s2152_s0 + $0x60] sm:$0xff]  ;;  %v1177_v22 = vld [vmem:[%s2152_s0 + $0x28] sm:$0xff]  ;;  %v1198_v25 = vld [vmem:[%s2152_s0 + $0xd0] sm:$0xff] }
   0x8   :  { %1207 = vmatpush.bf16.msra.mxu2 %v358_v3  ;;  %1208 = vmatpush.bf16.msra.mxu3 %v358_v3  ;;  %v1185_v23 = vld [vmem:[%s2152_s0 + $0x68] sm:$0xff]  ;;  %v1192_v24 = vld [vmem:[%s2152_s0 + $0xa0] sm:$0xff]  ;;  %v1178_v26 = vld [vmem:[%s2152_s0 + $0x30] sm:$0xff] }
   0x9   :  { %v1186_v27 = vld [vmem:[%s2152_s0 + $0x70] sm:$0xff]  ;;  %v1193_v28 = vld [vmem:[%s2152_s0 + $0xa8] sm:$0xff]  ;;  %v1199_v29 = vld [vmem:[%s2152_s0 + $0xd8] sm:$0xff] }
   0xa   :  { %v1179_v30 = vld [vmem:[%s2152_s0 + $0x38] sm:$0xff]  ;;  %v1194_v32 = vld [vmem:[%s2152_s0 + $0xb0] sm:$0xff]  ;;  %v1200_v33 = vld [vmem:[%s2152_s0 + $0xe0] sm:$0xff] }
   0xb   :  { %366 = vmatpush.bf16.msra.mxu0 %v1205_v4  ;;  %1209 = vmatpush.bf16.msra.mxu1 %v1205_v4  ;;  %v1187_v31 = vld [vmem:[%s2152_s0 + $0x78] sm:$0xff]  ;;  %v1201_v39 = vld [vmem:[%s2152_s0 + $0xe8] sm:$0xff]  ;;  %v1202_v60 = vld [vmem:[%s2152_s0 + $0xf0] sm:$0xff] }
   0xc   :  { %1210 = vmatpush.bf16.msra.mxu2 %v1205_v4  ;;  %1211 = vmatpush.bf16.msra.mxu3 %v1205_v4  ;;  %v1195_v38 = vld [vmem:[%s2152_s0 + $0xb8] sm:$0xff] }
   0xf   :  { %367 = vmatpush.bf16.msra.mxu0 %v1204_v5  ;;  %1212 = vmatpush.bf16.msra.mxu1 %v1204_v5 }
  0x10   :  { %1213 = vmatpush.bf16.msra.mxu2 %v1204_v5  ;;  %1214 = vmatpush.bf16.msra.mxu3 %v1204_v5 }
  0x12   :  { %1140 = vmatmul.msk.bf16.vlgmr.msra.gmra.mxu0 %vm259_vm1, %v1172_v6  ;;  %1148 = vmatmul.msk.bf16.vlgmr.msra.gmra.mxu1 %vm259_vm1, %v1180_v7 }
  0x13   :  { %1156 = vmatmul.msk.bf16.vlgmr.msra.gmra.mxu2 %vm259_vm1, %v1188_v10  ;;  %1164 = vmatmul.msk.bf16.vlgmr.msra.gmra.mxu3 %vm259_vm1, %v1196_v17 }
  0x22   :  { %1141 = vmatmul.msk.bf16.gmra.mxu0 %vm259_vm1, %v1173_v8  ;;  %1149 = vmatmul.msk.bf16.gmra.mxu1 %vm259_vm1, %v1181_v9 }
  0x23   :  { %1157 = vmatmul.msk.bf16.gmra.mxu2 %vm259_vm1, %v1189_v13  ;;  %1165 = vmatmul.msk.bf16.gmra.mxu3 %vm259_vm1, %v1197_v21 }
  0x32   :  { %1142 = vmatmul.msk.bf16.gmra.mxu0 %vm259_vm1, %v1174_v11  ;;  %1150 = vmatmul.msk.bf16.gmra.mxu1 %vm259_vm1, %v1182_v12 }
  0x33   :  { %1158 = vmatmul.msk.bf16.gmra.mxu2 %vm259_vm1, %v1190_v16  ;;  %1166 = vmatmul.msk.bf16.gmra.mxu3 %vm259_vm1, %v1198_v25 }
  0x42   :  { %1143 = vmatmul.msk.bf16.gmra.mxu0 %vm259_vm1, %v1175_v14  ;;  %1151 = vmatmul.msk.bf16.gmra.mxu1 %vm259_vm1, %v1183_v15 }
  0x43   :  { %1159 = vmatmul.msk.bf16.gmra.mxu2 %vm259_vm1, %v1191_v20  ;;  %1167 = vmatmul.msk.bf16.gmra.mxu3 %vm259_vm1, %v1199_v29 }
  0x52   :  { %1144 = vmatmul.msk.bf16.gmra.mxu0 %vm259_vm1, %v1176_v18  ;;  %1152 = vmatmul.msk.bf16.gmra.mxu1 %vm259_vm1, %v1184_v19  ;;  %v1203_v19 = vld [vmem:[%s2152_s0 + $0xf8] sm:$0xff] }
  0x53   :  { %1160 = vmatmul.msk.bf16.gmra.mxu2 %vm259_vm1, %v1192_v24  ;;  %1168 = vmatmul.msk.bf16.gmra.mxu3 %vm259_vm1, %v1200_v33 }
  0x62   :  { %1145 = vmatmul.msk.bf16.gmra.mxu0 %vm259_vm1, %v1177_v22  ;;  %1153 = vmatmul.msk.bf16.gmra.mxu1 %vm259_vm1, %v1185_v23 }
  0x63   :  { %1161 = vmatmul.msk.bf16.gmra.mxu2 %vm259_vm1, %v1193_v28  ;;  %1169 = vmatmul.msk.bf16.gmra.mxu3 %vm259_vm1, %v1201_v39 }
  0x72   :  { %1146 = vmatmul.msk.bf16.gmra.mxu0 %vm259_vm1, %v1178_v26  ;;  %1154 = vmatmul.msk.bf16.gmra.mxu1 %vm259_vm1, %v1186_v27 }
  0x73   :  { %1162 = vmatmul.msk.bf16.gmra.mxu2 %vm259_vm1, %v1194_v32  ;;  %1170 = vmatmul.msk.bf16.gmra.mxu3 %vm259_vm1, %v1202_v60 }
  0x82   :  { %1147 = vmatmul.msk.bf16.gmra.mxu0 %vm259_vm1, %v1179_v30  ;;  %1155 = vmatmul.msk.bf16.gmra.mxu1 %vm259_vm1, %v1187_v31 }
  0x83   :  { %1163 = vmatmul.msk.bf16.gmra.mxu2 %vm259_vm1, %v1195_v38  ;;  %1171 = vmatmul.msk.bf16.gmra.mxu3 %vm259_vm1, %v1203_v19 }
  0x8f   :  { %v369_v34 = vpop.f32.mrf.mxu0  ;;  %v1361_v35 = vpop.f32.mrf.mxu1 }
  0x90   :  { %v529_v36 = vpack.c.bf16 %v369_v34, %v369_v34  ;;  %v545_v37 = vpack.c.bf16 %v1361_v35, %v1361_v35  ;;  %v794_v40 = vmul.f32 %v369_v34, %v369_v34  ;;  %v659_v41 = vsel %vm658_vm3, %v369_v34, 0.0 }
  0x92   :  { %594 = vst.msk [vmem:[%s2153_s2] sm:$0xf] %vm593_vm2, %v529_v36  ;;  %v858_v49 = vsel %vm658_vm3, %v794_v40, 0.0 }
  0x93   :  { %610 = vst.msk [vmem:[%s2153_s2 + $0x40] sm:$0xf] %vm593_vm2, %v545_v37 }
  0x96   :  { %v1420_v4 = vpop.f32.mrf.mxu2  ;;  %v1525_v39 = vpop.f32.mrf.mxu3 }
  0x97   :  { %v371_v42 = vpop.f32.mrf.mxu0  ;;  %v1382_v43 = vpop.f32.mrf.mxu1  ;;  %v561_v8 = vpack.c.bf16 %v1420_v4, %v1420_v4 }
  0x98   :  { %v530_v44 = vpack.c.bf16 %v371_v42, %v371_v42  ;;  %v660_v45 = vsel %vm658_vm3, %v371_v42, 0.0  ;;  %v795_v46 = vmul.f32 %v371_v42, %v371_v42  ;;  %v546_v47 = vpack.c.bf16 %v1382_v43, %v1382_v43 }
  0x99   :  { %v661_v48 = vadd.f32 %v660_v45, %v659_v41  ;;  %626 = vst.msk [vmem:[%s2153_s2 + $0x80] sm:$0xf] %vm593_vm2, %v561_v8  ;;  %v577_v41 = vpack.c.bf16 %v1525_v39, %v1525_v39 }
  0x9a   :  { %595 = vst.msk [vmem:[%s2153_s2 + $0x4] sm:$0xf] %vm593_vm2, %v530_v44  ;;  %v859_v50 = vsel %vm658_vm3, %v795_v46, 0.0 }
  0x9b   :  { %v860_v51 = vadd.f32 %v859_v50, %v858_v49  ;;  %611 = vst.msk [vmem:[%s2153_s2 + $0x44] sm:$0xf] %vm593_vm2, %v546_v47 }
  0x9c   :  { %642 = vst.msk [vmem:[%s2153_s2 + $0xc0] sm:$0xf] %vm593_vm2, %v577_v41 }
  0x9e   :  { %v1442_v15 = vpop.f32.mrf.mxu2 }
  0x9f   :  { %v374_v52 = vpop.f32.mrf.mxu0  ;;  %v1397_v53 = vpop.f32.mrf.mxu1  ;;  %v562_v17 = vpack.c.bf16 %v1442_v15, %v1442_v15 }
  0xa0   :  { %v531_v54 = vpack.c.bf16 %v374_v52, %v374_v52  ;;  %v662_v55 = vsel %vm658_vm3, %v374_v52, 0.0  ;;  %v796_v56 = vmul.f32 %v374_v52, %v374_v52  ;;  %v547_v57 = vpack.c.bf16 %v1397_v53, %v1397_v53 }
  0xa1   :  { %v663_v58 = vadd.f32 %v662_v55, %v661_v48  ;;  %627 = vst.msk [vmem:[%s2153_s2 + $0x84] sm:$0xf] %vm593_vm2, %v562_v17  ;;  %v1557_v48 = vpop.f32.mrf.mxu3 }
  0xa2   :  { %596 = vst.msk [vmem:[%s2153_s2 + $0x8] sm:$0xf] %vm593_vm2, %v531_v54  ;;  %v861_v59 = vsel %vm658_vm3, %v796_v56, 0.0  ;;  %v578_v50 = vpack.c.bf16 %v1557_v48, %v1557_v48 }
  0xa3   :  { %v862_v61 = vadd.f32 %v861_v59, %v860_v51  ;;  %612 = vst.msk [vmem:[%s2153_s2 + $0x48] sm:$0xf] %vm593_vm2, %v547_v57 }
  0xa4   :  { %643 = vst.msk [vmem:[%s2153_s2 + $0xc4] sm:$0xf] %vm593_vm2, %v578_v50 }
  0xa6   :  { %v1475_v25 = vpop.f32.mrf.mxu2 }
  0xa7   :  { %v376_v62 = vpop.f32.mrf.mxu0  ;;  %v1415_v63 = vpop.f32.mrf.mxu1  ;;  %v563_v26 = vpack.c.bf16 %v1475_v25, %v1475_v25 }
  0xa8   :  { %v532_v0 = vpack.c.bf16 %v376_v62, %v376_v62  ;;  %v664_v1 = vsel %vm658_vm3, %v376_v62, 0.0  ;;  %v797_v2 = vmul.f32 %v376_v62, %v376_v62  ;;  %v548_v3 = vpack.c.bf16 %v1415_v63, %v1415_v63 }
  0xa9   :  { %v665_v5 = vadd.f32 %v664_v1, %v663_v58  ;;  %628 = vst.msk [vmem:[%s2153_s2 + $0x88] sm:$0xf] %vm593_vm2, %v563_v26  ;;  %v1589_v57 = vpop.f32.mrf.mxu3 }
  0xaa   :  { %597 = vst.msk [vmem:[%s2153_s2 + $0xc] sm:$0xf] %vm593_vm2, %v532_v0  ;;  %v863_v6 = vsel %vm658_vm3, %v797_v2, 0.0  ;;  %v579_v59 = vpack.c.bf16 %v1589_v57, %v1589_v57 }
  0xab   :  { %v864_v7 = vadd.f32 %v863_v6, %v862_v61  ;;  %613 = vst.msk [vmem:[%s2153_s2 + $0x4c] sm:$0xf] %vm593_vm2, %v548_v3 }
  0xac   :  { %644 = vst.msk [vmem:[%s2153_s2 + $0xc8] sm:$0xf] %vm593_vm2, %v579_v59 }
  0xae   :  { %v1499_v31 = vpop.f32.mrf.mxu2 }
  0xaf   :  { %v379_v9 = vpop.f32.mrf.mxu0  ;;  %v1437_v10 = vpop.f32.mrf.mxu1  ;;  %v564_v32 = vpack.c.bf16 %v1499_v31, %v1499_v31 }
  0xb0   :  { %v533_v11 = vpack.c.bf16 %v379_v9, %v379_v9  ;;  %v666_v12 = vsel %vm658_vm3, %v379_v9, 0.0  ;;  %v798_v13 = vmul.f32 %v379_v9, %v379_v9  ;;  %v549_v14 = vpack.c.bf16 %v1437_v10, %v1437_v10 }
  0xb1   :  { %v1444_v16 = vadd.f32 %v666_v12, %v665_v5  ;;  %629 = vst.msk [vmem:[%s2153_s2 + $0x8c] sm:$0xf] %vm593_vm2, %v564_v32  ;;  %v1621_v2 = vpop.f32.mrf.mxu3 }
  0xb2   :  { %598 = vst.msk [vmem:[%s2153_s2 + $0x10] sm:$0xf] %vm593_vm2, %v533_v11  ;;  %v865_v18 = vsel %vm658_vm3, %v798_v13, 0.0  ;;  %v580_v5 = vpack.c.bf16 %v1621_v2, %v1621_v2 }
  0xb3   :  { %v1456_v20 = vadd.f32 %v865_v18, %v864_v7  ;;  %614 = vst.msk [vmem:[%s2153_s2 + $0x50] sm:$0xf] %vm593_vm2, %v549_v14 }
  0xb4   :  { %645 = vst.msk [vmem:[%s2153_s2 + $0xcc] sm:$0xf] %vm593_vm2, %v580_v5 }
  0xb6   :  { %v1523_v38 = vpop.f32.mrf.mxu2 }
  0xb7   :  { %v1467_v21 = vpop.f32.mrf.mxu0  ;;  %v1469_v22 = vpop.f32.mrf.mxu1  ;;  %v565_v40 = vpack.c.bf16 %v1523_v38, %v1523_v38 }
  0xb8   :  { %v534_v23 = vpack.c.bf16 %v1467_v21, %v1467_v21  ;;  %v550_v24 = vpack.c.bf16 %v1469_v22, %v1469_v22  ;;  %v799_v17 = vmul.f32 %v1467_v21, %v1467_v21 }
  0xb9   :  { %630 = vst.msk [vmem:[%s2153_s2 + $0x90] sm:$0xf] %vm593_vm2, %v565_v40  ;;  %v1649_v12 = vpop.f32.mrf.mxu3 }
  0xba   :  { %599 = vst.msk [vmem:[%s2153_s2 + $0x14] sm:$0xf] %vm593_vm2, %v534_v23  ;;  %v581_v32 = vpack.c.bf16 %v1649_v12, %v1649_v12 }
  0xbb   :  { %615 = vst.msk [vmem:[%s2153_s2 + $0x54] sm:$0xf] %vm593_vm2, %v550_v24 }
  0xbc   :  { %646 = vst.msk [vmem:[%s2153_s2 + $0xd0] sm:$0xf] %vm593_vm2, %v581_v32 }
  0xbe   :  { %v1555_v47 = vpop.f32.mrf.mxu2 }
  0xbf   :  { %v1491_v27 = vpop.f32.mrf.mxu0  ;;  %v1493_v28 = vpop.f32.mrf.mxu1  ;;  %v566_v49 = vpack.c.bf16 %v1555_v47, %v1555_v47 }
  0xc0   :  { %v535_v29 = vpack.c.bf16 %v1491_v27, %v1491_v27  ;;  %v551_v30 = vpack.c.bf16 %v1493_v28, %v1493_v28 }
  0xc1   :  { %631 = vst.msk [vmem:[%s2153_s2 + $0x94] sm:$0xf] %vm593_vm2, %v566_v49  ;;  %v1667_v24 = vpop.f32.mrf.mxu3 }
  0xc2   :  { %600 = vst.msk [vmem:[%s2153_s2 + $0x18] sm:$0xf] %vm593_vm2, %v535_v29  ;;  %v668_v29 = vsel %vm658_vm3, %v1467_v21, 0.0  ;;  %v867_v21 = vsel %vm658_vm3, %v799_v17, 0.0 }
  0xc3   :  { %616 = vst.msk [vmem:[%s2153_s2 + $0x58] sm:$0xf] %vm593_vm2, %v551_v30  ;;  %v800_v30 = vmul.f32 %v1491_v27, %v1491_v27  ;;  %v669_v41 = vadd.f32 %v668_v29, %v1444_v16  ;;  %v868_v16 = vadd.f32 %v867_v21, %v1456_v20 }
  0xc6   :  { %v1587_v56 = vpop.f32.mrf.mxu2 }
  0xc7   :  { %v1515_v33 = vpop.f32.mrf.mxu0  ;;  %v1517_v34 = vpop.f32.mrf.mxu1  ;;  %v567_v58 = vpack.c.bf16 %v1587_v56, %v1587_v56 }
  0xc8   :  { %v536_v36 = vpack.c.bf16 %v1515_v33, %v1515_v33  ;;  %v552_v37 = vpack.c.bf16 %v1517_v34, %v1517_v34 }
  0xc9   :  { %632 = vst.msk [vmem:[%s2153_s2 + $0x98] sm:$0xf] %vm593_vm2, %v567_v58 }
  0xca   :  { %601 = vst.msk [vmem:[%s2153_s2 + $0x1c] sm:$0xf] %vm593_vm2, %v536_v36  ;;  %v801_v36 = vmul.f32 %v1515_v33, %v1515_v33 }
  0xcb   :  { %617 = vst.msk [vmem:[%s2153_s2 + $0x5c] sm:$0xf] %vm593_vm2, %v552_v37  ;;  %v670_v37 = vsel %vm658_vm3, %v1491_v27, 0.0  ;;  %v869_v27 = vsel %vm658_vm3, %v800_v30, 0.0 }
  0xcc   :  { %v671_v50 = vadd.f32 %v670_v37, %v669_v41  ;;  %v870_v5 = vadd.f32 %v869_v27, %v868_v16 }
  0xce   :  { %v1619_v1 = vpop.f32.mrf.mxu2 }
  0xcf   :  { %v1547_v42 = vpop.f32.mrf.mxu0  ;;  %v1549_v44 = vpop.f32.mrf.mxu1  ;;  %v568_v3 = vpack.c.bf16 %v1619_v1, %v1619_v1 }
  0xd0   :  { %v537_v45 = vpack.c.bf16 %v1547_v42, %v1547_v42  ;;  %v553_v46 = vpack.c.bf16 %v1549_v44, %v1549_v44  ;;  %v802_v49 = vmul.f32 %v1547_v42, %v1547_v42 }
  0xd1   :  { %633 = vst.msk [vmem:[%s2153_s2 + $0x9c] sm:$0xf] %vm593_vm2, %v568_v3  ;;  %v1728_v3 = vpop.f32.mrf.mxu3 }
  0xd2   :  { %602 = vst.msk [vmem:[%s2153_s2 + $0x20] sm:$0xf] %vm593_vm2, %v537_v45  ;;  %v582_v45 = vpack.c.bf16 %v1667_v24, %v1667_v24 }
  0xd3   :  { %618 = vst.msk [vmem:[%s2153_s2 + $0x60] sm:$0xf] %vm593_vm2, %v553_v46  ;;  %v672_v46 = vsel %vm658_vm3, %v1515_v33, 0.0  ;;  %v674_v33 = vsel %vm658_vm3, %v1547_v42, 0.0 }
  0xd4   :  { %647 = vst.msk [vmem:[%s2153_s2 + $0xd4] sm:$0xf] %vm593_vm2, %v582_v45 }
  0xd6   :  { %v1647_v11 = vpop.f32.mrf.mxu2 }
  0xd7   :  { %v1579_v51 = vpop.f32.mrf.mxu0  ;;  %v1581_v52 = vpop.f32.mrf.mxu1  ;;  %v569_v26 = vpack.c.bf16 %v1647_v11, %v1647_v11 }
  0xd8   :  { %v538_v54 = vpack.c.bf16 %v1579_v51, %v1579_v51  ;;  %v554_v55 = vpack.c.bf16 %v1581_v52, %v1581_v52  ;;  %v803_v59 = vmul.f32 %v1579_v51, %v1579_v51  ;;  %v676_v17 = vsel %vm658_vm3, %v1579_v51, 0.0 }
  0xd9   :  { %634 = vst.msk [vmem:[%s2153_s2 + $0xa0] sm:$0xf] %vm593_vm2, %v569_v26 }
  0xda   :  { %603 = vst.msk [vmem:[%s2153_s2 + $0x24] sm:$0xf] %vm593_vm2, %v538_v54  ;;  %v871_v54 = vsel %vm658_vm3, %v801_v36, 0.0  ;;  %v875_v29 = vsel %vm658_vm3, %v803_v59, 0.0 }
  0xdb   :  { %619 = vst.msk [vmem:[%s2153_s2 + $0x64] sm:$0xf] %vm593_vm2, %v554_v55 }
  0xde   :  { %v1665_v23 = vpop.f32.mrf.mxu2 }
  0xdf   :  { %v1611_v60 = vpop.f32.mrf.mxu0  ;;  %v1613_v61 = vpop.f32.mrf.mxu1  ;;  %v570_v40 = vpack.c.bf16 %v1665_v23, %v1665_v23 }
  0xe0   :  { %v539_v62 = vpack.c.bf16 %v1611_v60, %v1611_v60  ;;  %v555_v0 = vpack.c.bf16 %v1613_v61, %v1613_v61  ;;  %v804_v42 = vmul.f32 %v1611_v60, %v1611_v60  ;;  %v678_v51 = vsel %vm658_vm3, %v1611_v60, 0.0 }
  0xe1   :  { %635 = vst.msk [vmem:[%s2153_s2 + $0xa4] sm:$0xf] %vm593_vm2, %v570_v40 }
  0xe2   :  { %604 = vst.msk [vmem:[%s2153_s2 + $0x28] sm:$0xf] %vm593_vm2, %v539_v62  ;;  %v877_v36 = vsel %vm658_vm3, %v804_v42, 0.0 }
  0xe3   :  { %620 = vst.msk [vmem:[%s2153_s2 + $0x68] sm:$0xf] %vm593_vm2, %v555_v0 }
  0xe6   :  { %v1726_v0 = vpop.f32.mrf.mxu2 }
  0xe7   :  { %v396_v6 = vpop.f32.mrf.mxu0  ;;  %v1643_v7 = vpop.f32.mrf.mxu1 }
  0xe8   :  { %v540_v8 = vpack.c.bf16 %v396_v6, %v396_v6  ;;  %v556_v9 = vpack.c.bf16 %v1643_v7, %v1643_v7  ;;  %v805_v26 = vmul.f32 %v396_v6, %v396_v6  ;;  %v680_v21 = vsel %vm658_vm3, %v396_v6, 0.0 }
  0xea   :  { %605 = vst.msk [vmem:[%s2153_s2 + $0x2c] sm:$0xf] %vm593_vm2, %v540_v8  ;;  %v673_v8 = vadd.f32 %v672_v46, %v671_v50  ;;  %v879_v45 = vsel %vm658_vm3, %v805_v26, 0.0 }
  0xeb   :  { %621 = vst.msk [vmem:[%s2153_s2 + $0x6c] sm:$0xf] %vm593_vm2, %v556_v9  ;;  %v873_v9 = vsel %vm658_vm3, %v802_v49, 0.0 }
  0xef   :  { %v399_v13 = vpop.f32.mrf.mxu0  ;;  %v1659_v14 = vpop.f32.mrf.mxu1 }
  0xf0   :  { %v541_v18 = vpack.c.bf16 %v399_v13, %v399_v13  ;;  %v557_v19 = vpack.c.bf16 %v1659_v14, %v1659_v14  ;;  %v806_v37 = vmul.f32 %v399_v13, %v399_v13  ;;  %v682_v49 = vsel %vm658_vm3, %v399_v13, 0.0 }
  0xf2   :  { %606 = vst.msk [vmem:[%s2153_s2 + $0x30] sm:$0xf] %vm593_vm2, %v541_v18  ;;  %v872_v18 = vadd.f32 %v871_v54, %v870_v5  ;;  %v1754_v54 = vpop.f32.mrf.mxu2 }
  0xf3   :  { %622 = vst.msk [vmem:[%s2153_s2 + $0x70] sm:$0xf] %vm593_vm2, %v557_v19  ;;  %v675_v19 = vadd.f32 %v674_v33, %v673_v8  ;;  %v1756_v33 = vpop.f32.mrf.mxu3  ;;  %v583_v8 = vpack.c.bf16 %v1728_v3, %v1728_v3 }
  0xf4   :  { %v874_v30 = vadd.f32 %v873_v9, %v872_v18  ;;  %v572_v18 = vpack.c.bf16 %v1754_v54, %v1754_v54 }
  0xf5   :  { %v677_v32 = vadd.f32 %v676_v17, %v675_v19  ;;  %648 = vst.msk [vmem:[%s2153_s2 + $0xd8] sm:$0xf] %vm593_vm2, %v583_v8  ;;  %v692_v8 = vsel %vm658_vm3, %v1382_v43, 0.0 }
  0xf6   :  { %v876_v40 = vadd.f32 %v875_v29, %v874_v30  ;;  %v584_v29 = vpack.c.bf16 %v1756_v33, %v1756_v33  ;;  %637 = vst.msk [vmem:[%s2153_s2 + $0xac] sm:$0xf] %vm593_vm2, %v572_v18  ;;  %v810_v30 = vmul.f32 %v1361_v35, %v1361_v35  ;;  %v813_v18 = vmul.f32 %v1415_v63, %v1415_v63 }
  0xf7   :  { %v401_v55 = vpop.f32.mrf.mxu0  ;;  %v1714_v58 = vpop.f32.mrf.mxu1  ;;  %v679_v41 = vadd.f32 %v678_v51, %v677_v32 }
  0xf8   :  { %v542_v62 = vpack.c.bf16 %v401_v55, %v401_v55  ;;  %v558_v20 = vpack.c.bf16 %v1714_v58, %v1714_v58  ;;  %v807_v16 = vmul.f32 %v401_v55, %v401_v55  ;;  %v878_v6 = vadd.f32 %v877_v36, %v876_v40  ;;  %649 = vst.msk [vmem:[%s2153_s2 + $0xdc] sm:$0xf] %vm593_vm2, %v584_v29 }
  0xf9   :  { %v681_v59 = vadd.f32 %v680_v21, %v679_v41  ;;  %v684_v5 = vsel %vm658_vm3, %v401_v55, 0.0 }
  0xfa   :  { %607 = vst.msk [vmem:[%s2153_s2 + $0x34] sm:$0xf] %vm593_vm2, %v542_v62  ;;  %v571_v62 = vpack.c.bf16 %v1726_v0, %v1726_v0  ;;  %v880_v9 = vadd.f32 %v879_v45, %v878_v6  ;;  %v883_v42 = vsel %vm658_vm3, %v807_v16, 0.0  ;;  %v690_v6 = vsel %vm658_vm3, %v1361_v35, 0.0 }
  0xfb   :  { %623 = vst.msk [vmem:[%s2153_s2 + $0x74] sm:$0xf] %vm593_vm2, %v558_v20  ;;  %v881_v20 = vsel %vm658_vm3, %v806_v37, 0.0  ;;  %v683_v17 = vadd.f32 %v682_v49, %v681_v59  ;;  %v1802_v49 = vpop.f32.mrf.mxu2  ;;  %v1804_v16 = vpop.f32.mrf.mxu3  ;;  %v811_v59 = vmul.f32 %v1382_v43, %v1382_v43  ;;  %v889_v35 = vsel %vm658_vm3, %v810_v30, 0.0 }
  0xfc   :  { %636 = vst.msk [vmem:[%s2153_s2 + $0xa8] sm:$0xf] %vm593_vm2, %v571_v62  ;;  %v882_v19 = vadd.f32 %v881_v20, %v880_v9  ;;  %v812_v20 = vmul.f32 %v1397_v53, %v1397_v53  ;;  %v814_v43 = vmul.f32 %v1437_v10, %v1437_v10  ;;  %v573_v30 = vpack.c.bf16 %v1802_v49, %v1802_v49 }
  0xfd   :  { %v685_v26 = vadd.f32 %v684_v5, %v683_v17 }
  0xfe   :  { %v884_v32 = vadd.f32 %v883_v42, %v882_v19  ;;  %v891_v42 = vsel %vm658_vm3, %v811_v59, 0.0  ;;  %v893_v19 = vsel %vm658_vm3, %v812_v20, 0.0  ;;  %638 = vst.msk [vmem:[%s2153_s2 + $0xb0] sm:$0xf] %vm593_vm2, %v573_v30  ;;  %v700_v59 = vsel %vm658_vm3, %v1469_v22, 0.0 }
  0xff   :  { %v404_v27 = vpop.f32.mrf.mxu0  ;;  %v1749_v46 = vpop.f32.mrf.mxu1 }
 0x100   :  { %v543_v50 = vpack.c.bf16 %v404_v27, %v404_v27  ;;  %v559_v60 = vpack.c.bf16 %v1749_v46, %v1749_v46  ;;  %v808_v13 = vmul.f32 %v404_v27, %v404_v27  ;;  %v686_v55 = vsel %vm658_vm3, %v404_v27, 0.0 }
 0x101   :  { %v687_v36 = vadd.f32 %v686_v55, %v685_v26  ;;  %v694_v55 = vsel %vm658_vm3, %v1397_v53, 0.0 }
 0x102   :  { %608 = vst.msk [vmem:[%s2153_s2 + $0x38] sm:$0xf] %vm593_vm2, %v543_v50  ;;  %v885_v51 = vsel %vm658_vm3, %v808_v13, 0.0 }
 0x103   :  { %624 = vst.msk [vmem:[%s2153_s2 + $0x78] sm:$0xf] %vm593_vm2, %v559_v60  ;;  %v886_v50 = vadd.f32 %v885_v51, %v884_v32  ;;  %v696_v51 = vsel %vm658_vm3, %v1415_v63, 0.0  ;;  %v585_v32 = vpack.c.bf16 %v1804_v16, %v1804_v16  ;;  %v1838_v53 = vpop.f32.mrf.mxu2  ;;  %v698_v63 = vsel %vm658_vm3, %v1437_v10, 0.0 }
 0x105   :  { %650 = vst.msk [vmem:[%s2153_s2 + $0xe0] sm:$0xf] %vm593_vm2, %v585_v32 }
 0x107   :  { %v406_v21 = vpop.f32.mrf.mxu0  ;;  %v1793_v37 = vpop.f32.mrf.mxu1 }
 0x108   :  { %v544_v40 = vpack.c.bf16 %v406_v21, %v406_v21  ;;  %v688_v41 = vsel %vm658_vm3, %v406_v21, 0.0  ;;  %v809_v45 = vmul.f32 %v406_v21, %v406_v21  ;;  %v560_v27 = vpack.c.bf16 %v1793_v37, %v1793_v37 }
 0x109   :  { %v689_v60 = vadd.f32 %v688_v41, %v687_v36  ;;  %v1840_v36 = vpop.f32.mrf.mxu3  ;;  %v895_v41 = vsel %vm658_vm3, %v813_v18, 0.0 }
 0x10a   :  { %609 = vst.msk [vmem:[%s2153_s2 + $0x3c] sm:$0xf] %vm593_vm2, %v544_v40  ;;  %v887_v62 = vsel %vm658_vm3, %v809_v45, 0.0  ;;  %v815_v45 = vmul.f32 %v1469_v22, %v1469_v22  ;;  %v586_v10 = vpack.c.bf16 %v1840_v36, %v1840_v36  ;;  %v702_v22 = vsel %vm658_vm3, %v1493_v28, 0.0 }
 0x10b   :  { %v691_v5 = vadd.f32 %v690_v6, %v689_v60  ;;  %v888_v13 = vadd.f32 %v887_v62, %v886_v50  ;;  %625 = vst.msk [vmem:[%s2153_s2 + $0x7c] sm:$0xf] %vm593_vm2, %v560_v27  ;;  %v574_v27 = vpack.c.bf16 %v1838_v53, %v1838_v53  ;;  %v897_v6 = vsel %vm658_vm3, %v814_v43, 0.0  ;;  %v1882_v18 = vpop.f32.mrf.mxu2 }
 0x10c   :  { %v816_v62 = vmul.f32 %v1493_v28, %v1493_v28  ;;  %651 = vst.msk [vmem:[%s2153_s2 + $0xe4] sm:$0xf] %vm593_vm2, %v586_v10  ;;  %v819_v43 = vmul.f32 %v1581_v52, %v1581_v52 }
 0x10d   :  { %v693_v9 = vadd.f32 %v692_v8, %v691_v5  ;;  %v890_v17 = vadd.f32 %v889_v35, %v888_v13  ;;  %639 = vst.msk [vmem:[%s2153_s2 + $0xb4] sm:$0xf] %vm593_vm2, %v574_v27  ;;  %v899_v13 = vsel %vm658_vm3, %v815_v45, 0.0  ;;  %v817_v35 = vmul.f32 %v1517_v34, %v1517_v34 }
 0x10e   :  { %v907_v45 = vsel %vm658_vm3, %v819_v43, 0.0  ;;  %v821_v27 = vmul.f32 %v1643_v7, %v1643_v7  ;;  %v825_v43 = vmul.f32 %v1793_v37, %v1793_v37 }
 0x10f   :  { %v695_v26 = vadd.f32 %v694_v55, %v693_v9  ;;  %v892_v29 = vadd.f32 %v891_v42, %v890_v17  ;;  %v901_v17 = vsel %vm658_vm3, %v816_v62, 0.0  ;;  %v704_v42 = vsel %vm658_vm3, %v1517_v34, 0.0 }
 0x110   :  { %v818_v55 = vmul.f32 %v1549_v44, %v1549_v44  ;;  %v903_v28 = vsel %vm658_vm3, %v817_v35, 0.0  ;;  %v820_v34 = vmul.f32 %v1613_v61, %v1613_v61  ;;  %v823_v35 = vmul.f32 %v1714_v58, %v1714_v58 }
 0x111   :  { %v697_v21 = vadd.f32 %v696_v51, %v695_v26  ;;  %v894_v40 = vadd.f32 %v893_v19, %v892_v29  ;;  %v1884_v19 = vpop.f32.mrf.mxu3  ;;  %v706_v51 = vsel %vm658_vm3, %v1549_v44, 0.0  ;;  %v710_v44 = vsel %vm658_vm3, %v1613_v61, 0.0 }
 0x112   :  { %v587_v62 = vpack.c.bf16 %v1884_v19, %v1884_v19 }
 0x113   :  { %v699_v50 = vadd.f32 %v698_v63, %v697_v21  ;;  %v896_v60 = vadd.f32 %v895_v41, %v894_v40  ;;  %v905_v21 = vsel %vm658_vm3, %v818_v55, 0.0  ;;  %v708_v40 = vsel %vm658_vm3, %v1581_v52, 0.0  ;;  %v1910_v61 = vpop.f32.mrf.mxu2 }
 0x114   :  { %v822_v52 = vmul.f32 %v1659_v14, %v1659_v14  ;;  %652 = vst.msk [vmem:[%s2153_s2 + $0xe8] sm:$0xf] %vm593_vm2, %v587_v62  ;;  %v716_v55 = vsel %vm658_vm3, %v1714_v58, 0.0  ;;  %v718_v58 = vsel %vm658_vm3, %v1749_v46, 0.0 }
 0x115   :  { %v701_v20 = vadd.f32 %v700_v59, %v699_v50  ;;  %v898_v5 = vadd.f32 %v897_v6, %v896_v60  ;;  %v909_v50 = vsel %vm658_vm3, %v820_v34, 0.0  ;;  %v712_v6 = vsel %vm658_vm3, %v1643_v7, 0.0 }
 0x116   :  { %v575_v59 = vpack.c.bf16 %v1882_v18, %v1882_v18  ;;  %v714_v7 = vsel %vm658_vm3, %v1659_v14, 0.0 }
 0x117   :  { %v900_v8 = vadd.f32 %v899_v13, %v898_v5  ;;  %v703_v9 = vadd.f32 %v702_v22, %v701_v20  ;;  %v911_v22 = vsel %vm658_vm3, %v821_v27, 0.0  ;;  %v919_v27 = vsel %vm658_vm3, %v825_v43, 0.0 }
 0x118   :  { %640 = vst.msk [vmem:[%s2153_s2 + $0xb8] sm:$0xf] %vm593_vm2, %v575_v59 }
 0x119   :  { %v705_v26 = vadd.f32 %v704_v42, %v703_v9  ;;  %v902_v29 = vadd.f32 %v901_v17, %v900_v8  ;;  %v1912_v20 = vpop.f32.mrf.mxu3  ;;  %v576_v8 = vpack.c.bf16 %v1910_v61, %v1910_v61  ;;  %v913_v42 = vsel %vm658_vm3, %v822_v52, 0.0 }
 0x11a   :  { %v588_v14 = vpack.c.bf16 %v1912_v20, %v1912_v20 }
 0x11b   :  { %v707_v30 = vadd.f32 %v706_v51, %v705_v26  ;;  %v904_v32 = vadd.f32 %v903_v28, %v902_v29  ;;  %v824_v26 = vmul.f32 %v1749_v46, %v1749_v46  ;;  %641 = vst.msk [vmem:[%s2153_s2 + $0xbc] sm:$0xf] %vm593_vm2, %v576_v8  ;;  %v915_v51 = vsel %vm658_vm3, %v823_v35, 0.0 }
 0x11c   :  { %653 = vst.msk [vmem:[%s2153_s2 + $0xec] sm:$0xf] %vm593_vm2, %v588_v14  ;;  %v722_v46 = vsel %vm658_vm3, %v1420_v4, 0.0  ;;  %v830_v35 = vmul.f32 %v1523_v38, %v1523_v38 }
 0x11d   :  { %v709_v41 = vadd.f32 %v708_v40, %v707_v30  ;;  %v906_v63 = vadd.f32 %v905_v21, %v904_v32  ;;  %v826_v32 = vmul.f32 %v1420_v4, %v1420_v4  ;;  %v917_v21 = vsel %vm658_vm3, %v824_v26, 0.0 }
 0x11e   :  { %v720_v40 = vsel %vm658_vm3, %v1793_v37, 0.0  ;;  %v828_v37 = vmul.f32 %v1475_v25, %v1475_v25  ;;  %v726_v4 = vsel %vm658_vm3, %v1475_v25, 0.0 }
 0x11f   :  { %v711_v60 = vadd.f32 %v710_v44, %v709_v41  ;;  %v908_v10 = vadd.f32 %v907_v45, %v906_v63  ;;  %v827_v44 = vmul.f32 %v1442_v15, %v1442_v15 }
 0x121   :  { %v713_v5 = vadd.f32 %v712_v6, %v711_v60  ;;  %v910_v13 = vadd.f32 %v909_v50, %v908_v10  ;;  %v1954_v41 = vpop.f32.mrf.mxu3  ;;  %v921_v10 = vsel %vm658_vm3, %v826_v32, 0.0  ;;  %v724_v6 = vsel %vm658_vm3, %v1442_v15, 0.0 }
 0x122   :  { %v923_v62 = vsel %vm658_vm3, %v827_v44, 0.0  ;;  %v728_v15 = vsel %vm658_vm3, %v1499_v31, 0.0  ;;  %v589_v8 = vpack.c.bf16 %v1954_v41, %v1954_v41  ;;  %v833_v32 = vmul.f32 %v1619_v1, %v1619_v1 }
 0x123   :  { %v715_v9 = vadd.f32 %v714_v7, %v713_v5  ;;  %v912_v17 = vadd.f32 %v911_v22, %v910_v13  ;;  %v829_v5 = vmul.f32 %v1499_v31, %v1499_v31  ;;  %v925_v7 = vsel %vm658_vm3, %v828_v37, 0.0 }
 0x124   :  { %v831_v31 = vmul.f32 %v1555_v47, %v1555_v47  ;;  %654 = vst.msk [vmem:[%s2153_s2 + $0xf0] sm:$0xf] %vm593_vm2, %v589_v8 }
 0x125   :  { %v914_v29 = vadd.f32 %v913_v42, %v912_v17  ;;  %v717_v28 = vadd.f32 %v716_v55, %v715_v9  ;;  %v927_v42 = vsel %vm658_vm3, %v829_v5, 0.0  ;;  %v730_v55 = vsel %vm658_vm3, %v1523_v38, 0.0 }
 0x126   :  { %v732_v38 = vsel %vm658_vm3, %v1555_v47, 0.0  ;;  %v736_v47 = vsel %vm658_vm3, %v1619_v1, 0.0  ;;  %v740_v1 = vsel %vm658_vm3, %v1665_v23, 0.0  ;;  %v837_v5 = vmul.f32 %v1754_v54, %v1754_v54 }
 0x127   :  { %v916_v34 = vadd.f32 %v915_v51, %v914_v29  ;;  %v719_v30 = vadd.f32 %v718_v58, %v717_v28  ;;  %v929_v28 = vsel %vm658_vm3, %v830_v35, 0.0  ;;  %v832_v51 = vmul.f32 %v1587_v56, %v1587_v56 }
 0x129   :  { %v918_v63 = vadd.f32 %v917_v21, %v916_v34  ;;  %v721_v45 = vadd.f32 %v720_v40, %v719_v30  ;;  %v1978_v9 = vpop.f32.mrf.mxu3  ;;  %v931_v34 = vsel %vm658_vm3, %v831_v31, 0.0  ;;  %v734_v30 = vsel %vm658_vm3, %v1587_v56, 0.0 }
 0x12a   :  { %v590_v14 = vpack.c.bf16 %v1978_v9, %v1978_v9  ;;  %v738_v56 = vsel %vm658_vm3, %v1647_v11, 0.0 }
 0x12b   :  { %v723_v50 = vadd.f32 %v722_v46, %v721_v45  ;;  %v920_v60 = vadd.f32 %v919_v27, %v918_v63  ;;  %v933_v63 = vsel %vm658_vm3, %v832_v51, 0.0  ;;  %v834_v45 = vmul.f32 %v1647_v11, %v1647_v11 }
 0x12c   :  { %655 = vst.msk [vmem:[%s2153_s2 + $0xf4] sm:$0xf] %vm593_vm2, %v590_v14  ;;  %v742_v11 = vsel %vm658_vm3, %v1726_v0, 0.0  ;;  %v943_v14 = vsel %vm658_vm3, %v837_v5, 0.0 }
 0x12d   :  { %v725_v52 = vadd.f32 %v724_v6, %v723_v50  ;;  %v922_v59 = vadd.f32 %v921_v10, %v920_v60  ;;  %v935_v50 = vsel %vm658_vm3, %v833_v32, 0.0  ;;  %v835_v60 = vmul.f32 %v1665_v23, %v1665_v23 }
 0x12e   :  { %v937_v37 = vsel %vm658_vm3, %v834_v45, 0.0  ;;  %v744_v23 = vsel %vm658_vm3, %v1754_v54, 0.0  ;;  %v839_v54 = vmul.f32 %v1838_v53, %v1838_v53  ;;  %v842_v32 = vmul.f32 %v1525_v39, %v1525_v39 }
 0x12f   :  { %v727_v13 = vadd.f32 %v726_v4, %v725_v52  ;;  %v924_v22 = vadd.f32 %v923_v62, %v922_v59  ;;  %v836_v52 = vmul.f32 %v1726_v0, %v1726_v0  ;;  %v939_v4 = vsel %vm658_vm3, %v835_v60, 0.0 }
 0x130   :  { %v947_v51 = vsel %vm658_vm3, %v839_v54, 0.0 }
 0x131   :  { %v729_v17 = vadd.f32 %v728_v15, %v727_v13  ;;  %v926_v25 = vadd.f32 %v925_v7, %v924_v22  ;;  %v2010_v46 = vpop.f32.mrf.mxu3  ;;  %v941_v7 = vsel %vm658_vm3, %v836_v52, 0.0  ;;  %v838_v15 = vmul.f32 %v1802_v49, %v1802_v49 }
 0x132   :  { %v591_v35 = vpack.c.bf16 %v2010_v46, %v2010_v46 }
 0x133   :  { %v731_v26 = vadd.f32 %v730_v55, %v729_v17  ;;  %v928_v29 = vadd.f32 %v927_v42, %v926_v25  ;;  %v746_v42 = vsel %vm658_vm3, %v1802_v49, 0.0  ;;  %v748_v49 = vsel %vm658_vm3, %v1838_v53, 0.0 }
 0x134   :  { %656 = vst.msk [vmem:[%s2153_s2 + $0xf8] sm:$0xf] %vm593_vm2, %v591_v35 }
 0x135   :  { %v733_v58 = vadd.f32 %v732_v38, %v731_v26  ;;  %v930_v43 = vadd.f32 %v929_v28, %v928_v29  ;;  %v945_v26 = vsel %vm658_vm3, %v838_v15, 0.0  ;;  %v840_v29 = vmul.f32 %v1882_v18, %v1882_v18 }
 0x136   :  { %v848_v15 = vmul.f32 %v1728_v3, %v1728_v3 }
 0x137   :  { %v932_v21 = vadd.f32 %v931_v34, %v930_v43  ;;  %v735_v40 = vadd.f32 %v734_v30, %v733_v58  ;;  %v750_v58 = vsel %vm658_vm3, %v1882_v18, 0.0  ;;  %v841_v43 = vmul.f32 %v1910_v61, %v1910_v61 }
 0x138   :  { %v949_v53 = vsel %vm658_vm3, %v840_v29, 0.0  ;;  %v843_v18 = vmul.f32 %v1557_v48, %v1557_v48  ;;  %v965_v54 = vsel %vm658_vm3, %v848_v15, 0.0  ;;  %v851_v29 = vmul.f32 %v1840_v36, %v1840_v36 }
 0x139   :  { %v737_v44 = vadd.f32 %v736_v47, %v735_v40  ;;  %v934_v27 = vadd.f32 %v933_v63, %v932_v21  ;;  %v2034_v8 = vpop.f32.mrf.mxu3  ;;  %v752_v21 = vsel %vm658_vm3, %v1910_v61, 0.0  ;;  %v754_v47 = vsel %vm658_vm3, %v1525_v39, 0.0 }
 0x13a   :  { %v592_v25 = vpack.c.bf16 %v2034_v8, %v2034_v8  ;;  %v951_v45 = vsel %vm658_vm3, %v841_v43, 0.0  ;;  %v844_v61 = vmul.f32 %v1589_v57, %v1589_v57  ;;  %v758_v39 = vsel %vm658_vm3, %v1589_v57, 0.0 }
 0x13b   :  { %v739_v10 = vadd.f32 %v738_v56, %v737_v44  ;;  %v936_v6 = vadd.f32 %v935_v50, %v934_v27  ;;  %v953_v50 = vsel %vm658_vm3, %v842_v32, 0.0  ;;  %v756_v56 = vsel %vm658_vm3, %v1557_v48, 0.0 }
 0x13c   :  { %657 = vst.msk [vmem:[%s2153_s2 + $0xfc] sm:$0xf] %vm593_vm2, %v592_v25  ;;  %v760_v48 = vsel %vm658_vm3, %v1621_v2, 0.0  ;;  %v762_v57 = vsel %vm658_vm3, %v1649_v12, 0.0  ;;  %v849_v25 = vmul.f32 %v1756_v33, %v1756_v33  ;;  %v853_v32 = vmul.f32 %v1912_v20, %v1912_v20 }
 0x13d   :  { %v741_v59 = vadd.f32 %v740_v1, %v739_v10  ;;  %v938_v62 = vadd.f32 %v937_v37, %v936_v6  ;;  %v955_v6 = vsel %vm658_vm3, %v843_v18, 0.0  ;;  %v845_v37 = vmul.f32 %v1621_v2, %v1621_v2 }
 0x13e   :  { %v764_v2 = vsel %vm658_vm3, %v1667_v24, 0.0 }
 0x13f   :  { %v743_v13 = vadd.f32 %v742_v11, %v741_v59  ;;  %v940_v22 = vadd.f32 %v939_v4, %v938_v62  ;;  %v957_v59 = vsel %vm658_vm3, %v844_v61, 0.0  ;;  %v846_v62 = vmul.f32 %v1649_v12, %v1649_v12 }
 0x140   :  { %v959_v5 = vsel %vm658_vm3, %v845_v37, 0.0  ;;  %v766_v12 = vsel %vm658_vm3, %v1728_v3, 0.0  ;;  %v770_v3 = vsel %vm658_vm3, %v1804_v16, 0.0  ;;  %v856_v61 = vmul.f32 %v2010_v46, %v2010_v46 }
 0x141   :  { %v745_v17 = vadd.f32 %v744_v23, %v743_v13  ;;  %v942_v0 = vadd.f32 %v941_v7, %v940_v22  ;;  %v847_v13 = vmul.f32 %v1667_v24, %v1667_v24  ;;  %v961_v23 = vsel %vm658_vm3, %v846_v62, 0.0 }
 0x142   :  { %v768_v24 = vsel %vm658_vm3, %v1756_v33, 0.0  ;;  %v772_v33 = vsel %vm658_vm3, %v1840_v36, 0.0  ;;  %v776_v36 = vsel %vm658_vm3, %v1912_v20, 0.0  ;;  %v780_v20 = vsel %vm658_vm3, %v1978_v9, 0.0 }
 0x143   :  { %v944_v55 = vadd.f32 %v943_v14, %v942_v0  ;;  %v747_v31 = vadd.f32 %v746_v42, %v745_v17  ;;  %v963_v0 = vsel %vm658_vm3, %v847_v13, 0.0 }
 0x145   :  { %v946_v28 = vadd.f32 %v945_v26, %v944_v55  ;;  %v749_v38 = vadd.f32 %v748_v49, %v747_v31  ;;  %v850_v55 = vmul.f32 %v1804_v16, %v1804_v16  ;;  %v967_v49 = vsel %vm658_vm3, %v849_v25, 0.0 }
 0x146   :  { %v774_v16 = vsel %vm658_vm3, %v1884_v19, 0.0 }
 0x147   :  { %v948_v34 = vadd.f32 %v947_v51, %v946_v28  ;;  %v751_v30 = vadd.f32 %v750_v58, %v749_v38  ;;  %v969_v51 = vsel %vm658_vm3, %v850_v55, 0.0  ;;  %v852_v58 = vmul.f32 %v1884_v19, %v1884_v19 }
 0x148   :  { %v778_v19 = vsel %vm658_vm3, %v1954_v41, 0.0 }
 0x149   :  { %v950_v40 = vadd.f32 %v949_v53, %v948_v34  ;;  %v753_v63 = vadd.f32 %v752_v21, %v751_v30  ;;  %v971_v30 = vsel %vm658_vm3, %v851_v29, 0.0 }
 0x14b   :  { %v755_v44 = vadd.f32 %v754_v47, %v753_v63  ;;  %v952_v27 = vadd.f32 %v951_v45, %v950_v40  ;;  %v973_v40 = vsel %vm658_vm3, %v852_v58, 0.0  ;;  %v854_v63 = vmul.f32 %v1954_v41, %v1954_v41 }
 0x14c   :  { %v975_v45 = vsel %vm658_vm3, %v853_v32, 0.0  ;;  %v782_v41 = vsel %vm658_vm3, %v2010_v46, 0.0 }
 0x14d   :  { %v757_v60 = vadd.f32 %v756_v56, %v755_v44  ;;  %v954_v10 = vadd.f32 %v953_v50, %v952_v27  ;;  %v855_v44 = vmul.f32 %v1978_v9, %v1978_v9  ;;  %v977_v56 = vsel %vm658_vm3, %v854_v63, 0.0 }
 0x14e   :  { %v784_v9 = vsel %vm658_vm3, %v2034_v8, 0.0 }
 0x14f   :  { %v759_v1 = vadd.f32 %v758_v39, %v757_v60  ;;  %v956_v52 = vadd.f32 %v955_v6, %v954_v10  ;;  %v979_v6 = vsel %vm658_vm3, %v855_v44, 0.0  ;;  %v857_v39 = vmul.f32 %v2034_v8, %v2034_v8 }
 0x151   :  { %v761_v4 = vadd.f32 %v760_v48, %v759_v1  ;;  %v958_v11 = vadd.f32 %v957_v59, %v956_v52  ;;  %v981_v52 = vsel %vm658_vm3, %v856_v61, 0.0  ;;  %v983_v62 = vsel %vm658_vm3, %v857_v39, 0.0 }
 0x153   :  { %v763_v22 = vadd.f32 %v762_v57, %v761_v4  ;;  %v960_v7 = vadd.f32 %v959_v5, %v958_v11 }
 0x155   :  { %v765_v35 = vadd.f32 %v764_v2, %v763_v22  ;;  %v962_v17 = vadd.f32 %v961_v23, %v960_v7 }
 0x157   :  { %v964_v14 = vadd.f32 %v963_v0, %v962_v17  ;;  %v767_v42 = vadd.f32 %v766_v12, %v765_v35 }
 0x159   :  { %v769_v31 = vadd.f32 %v768_v24, %v767_v42  ;;  %v966_v26 = vadd.f32 %v965_v54, %v964_v14 }
 0x15b   :  { %v771_v28 = vadd.f32 %v770_v3, %v769_v31  ;;  %v968_v38 = vadd.f32 %v967_v49, %v966_v26 }
 0x15d   :  { %v773_v43 = vadd.f32 %v772_v33, %v771_v28  ;;  %v970_v34 = vadd.f32 %v969_v51, %v968_v38 }
 0x15f   :  { %v775_v53 = vadd.f32 %v774_v16, %v773_v43  ;;  %v972_v21 = vadd.f32 %v971_v30, %v970_v34 }
 0x161   :  { %v777_v47 = vadd.f32 %v776_v36, %v775_v53  ;;  %v974_v18 = vadd.f32 %v973_v40, %v972_v21 }
 0x163   :  { %v976_v27 = vadd.f32 %v975_v45, %v974_v18  ;;  %v779_v50 = vadd.f32 %v778_v19, %v777_v47 }
 0x165   :  { %v978_v60 = vadd.f32 %v977_v56, %v976_v27  ;;  %v781_v10 = vadd.f32 %v780_v20, %v779_v50 }
 0x167   :  { %v980_v37 = vadd.f32 %v979_v6, %v978_v60  ;;  %v783_v1 = vadd.f32 %v782_v41, %v781_v10 }
 0x169   :  { %v982_v59 = vadd.f32 %v981_v52, %v980_v37  ;;  %v785_v48 = vadd.f32 %v784_v9, %v783_v1 }
 0x16b   :  { %v786_v4 = vrot.slane %v785_v48, 4  ;;  %v984_v11 = vadd.f32 %v983_v62, %v982_v59 }
 0x16d   :  { %v787_v5 = vadd.f32 %v786_v4, %v785_v48  ;;  %v985_v57 = vrot.slane %v984_v11, 4 }
 0x16f   :  { %v788_v13 = vrot.slane %v787_v5, 2  ;;  %v986_v46 = vadd.f32 %v985_v57, %v984_v11 }
 0x171   :  { %v789_v22 = vadd.f32 %v788_v13, %v787_v5  ;;  %v987_v7 = vrot.slane %v986_v46, 2 }
 0x173   :  { %v790_v23 = vrot.slane %v789_v22, 1  ;;  %v988_v2 = vadd.f32 %v987_v7, %v986_v46 }
 0x175   :  { %v791_v15 = vadd.f32 %v790_v23, %v789_v22  ;;  %v989_v35 = vrot.slane %v988_v2, 1 }
 0x177   :  { %793 = vst.msk [vmem:[%s2154_s3] sm:$0x1] %vm792_vm4, %v791_v15  ;;  %v990_v8 = vadd.f32 %v989_v35, %v988_v2 }
 0x179   :  { %991 = vst.msk [vmem:[%s2155_s4] sm:$0x1] %vm792_vm4, %v990_v8 }

// kernel: tile.33
= control target key start
LH: loop header
LB: loop body
LE: loop exit
PB: predicated region body
PF: predicated region fallthrough
CT: control target
= control target key end

     0   :  { %s22_s0 = inlined_call_operand.vmem [shape: f32[16], index: 0, kind: input, shape index: {}]   ;;  %s23_s1 = inlined_call_operand.vmem [shape: f32[8,16], index: 1, kind: output, shape index: {}]  }
   0x1   :  { %v4_v0 = vld [vmem:[%s22_s0] ss:$0 sm:$0xff] }
   0x2   :  { %5 = vst [vmem:[%s23_s1] sm:$0xff] %v4_v0 }

// kernel: tile.34
= control target key start
LH: loop header
LB: loop body
LE: loop exit
PB: predicated region body
PF: predicated region fallthrough
CT: control target
= control target key end

     0   :  { %s67_s10 = smov 112   ;;  %s68_s11 = smov 80   ;;  %vm3_vm0 = vcmask 130048   ;;  %vm9_vm1 = vcmask 1048448   ;;  %vm15_vm2 = vcmask 917248   ;;  %vm21_vm3 = vcmask 786048   ;;  %s111_s0 = inlined_call_operand.vmem [shape: f32[8,16], index: 0, kind: input, shape index: {}]   ;;  %s112_s1 = inlined_call_operand.vmem [shape: f32[1,128], index: 1, kind: output, shape index: {}]  }
   0x1   :  { %v53_v0 = vld [vmem:[%s111_s0 + $0x7] sm:$0x1]   ;;  %v55_v1 = vld [vmem:[%s111_s0 + $0x5] sm:$0x1]   ;;  %v57_v2 = vld [vmem:[%s111_s0 + $0x3] sm:$0x1]  }
   0x2   :  { %7 = vrot.lane.b32.xlu0 %v53_v0, %s67_s10  ;;  %19 = vrot.lane.b32.xlu1 %v55_v1, %s68_s11  ;;  %s69_s14 = smov 48   ;;  %v54_v3 = vld [vmem:[%s111_s0 + $0x6] sm:$0x1]   ;;  %v56_v4 = vld [vmem:[%s111_s0 + $0x4] sm:$0x1]   ;;  %s70_s21 = smov 96  }
   0x3   :  { %31 = vrot.lane.b32.xlu2 %v57_v2, %s69_s14  ;;  %v58_v5 = vld [vmem:[%s111_s0 + $0x2] sm:$0x1]   ;;  %s71_s22 = smov 64   ;;  %s72_s23 = smov 32   ;;  %v59_v6 = vld [vmem:[%s111_s0 + $0x1] sm:$0x1]  }
   0x4   :  { %s73_s26 = smov 16   ;;  %v2_v7 = vld [vmem:[%s111_s0] sm:$0x1]   ;;  %vm27_vm4 = vcmask 654848   ;;  %vm33_vm5 = vcmask 523648   ;;  %vm39_vm6 = vcmask 392448  }
   0x5   :  { %4 = vst.msk [vmem:[#allocation0] sm:$0x1] %vm3_vm0, %v2_v7   ;;  %vm45_vm7 = vcmask 261248  }
   0xa   :  { %13 = vrot.lane.b32.xlu0 %v54_v3, %s70_s21  ;;  %25 = vrot.lane.b32.xlu1 %v56_v4, %s71_s22 }
   0xb   :  { %37 = vrot.lane.b32.xlu2 %v58_v5, %s72_s23 }
  0x12   :  { %43 = vrot.lane.b32.xlu0 %v59_v6, %s73_s26 }
  0x5d   :  { %v32_v8 = vpop.permute.xlu2 %31  }
  0x65   :  { %v38_v9 = vpop.permute.xlu2 %37  }
  0x74   :  { %v8_v10 = vpop.permute.xlu0 %7   ;;  %v20_v11 = vpop.permute.xlu1 %19  }
  0x75   :  { %10 = vst.msk [vmem:[#allocation0] sm:$0x1] %vm9_vm1, %v8_v10  }
  0x7c   :  { %v14_v12 = vpop.permute.xlu0 %13   ;;  %v26_v13 = vpop.permute.xlu1 %25  }
  0x7d   :  { %16 = vst.msk [vmem:[#allocation0] sm:$0x1] %vm15_vm2, %v14_v12  }
  0x7e   :  { %22 = vst.msk [vmem:[#allocation0] sm:$0x1] %vm21_vm3, %v20_v11  }
  0x7f   :  { %28 = vst.msk [vmem:[#allocation0] sm:$0x1] %vm27_vm4, %v26_v13  }
  0x80   :  { %34 = vst.msk [vmem:[#allocation0] sm:$0x1] %vm33_vm5, %v32_v8  }
  0x81   :  { %40 = vst.msk [vmem:[#allocation0] sm:$0x1] %vm39_vm6, %v38_v9  }
  0x84   :  { %v44_v14 = vpop.permute.xlu0 %43  }
  0x85   :  { %46 = vst.msk [vmem:[#allocation0] sm:$0x1] %vm45_vm7, %v44_v14  }
  0x8c   :  { %v49_v15 = vld [vmem:[#allocation0] sm:$0x1] }
  0x8d   :  { %52 = vst [vmem:[%s112_s1] sm:$0x1] %v49_v15 }

// kernel: focus_forward.6
= control target key start
LH: loop header
LB: loop body
LE: loop exit
PB: predicated region body
PF: predicated region fallthrough
CT: control target
= control target key end

     0   :  { %vm132_vm0 = vcmask 1043456   ;;  %vm107_vm1 = vcmask 588800   ;;  %vm201_vm2 = vcmask 125952   ;;  %vm218_vm3 = vcmask 130048   ;;  %s616_s1 = inlined_call_operand.vmem [shape: bf16[72,16], index: 1, kind: input, shape index: {}]   ;;  %s617_s0 = inlined_call_operand.vmem [shape: bf16[128,72], index: 0, kind: input, shape index: {}]   ;;  %s618_s2 = inlined_call_operand.vmem [shape: bf16[128,16], index: 2, kind: output, shape index: {0}]   ;;  %s619_s3 = inlined_call_operand.vmem [shape: f32[1,1,16], index: 3, kind: output, shape index: {1}]   ;;  %s620_s4 = inlined_call_operand.vmem [shape: f32[1,1,16], index: 4, kind: output, shape index: {2}]  }
   0x1   :  { %v39_v0 = vld [vmem:[%s616_s1 + $0x20] sm:$0xf]  ;;  %v391_v4 = vld [vmem:[%s616_s1 + $0x18] sm:$0xff]  ;;  %v390_v5 = vld [vmem:[%s616_s1 + $0x10] sm:$0xff]  ;;  %vm256_vm4 = vcmask 122880  }
   0x2   :  { %v97_v1 = vunpack.c.l.b16 %v39_v0  ;;  %v389_v6 = vld [vmem:[%s616_s1 + $0x8] sm:$0xff]  ;;  %v388_v7 = vld [vmem:[%s616_s1] sm:$0xff]  ;;  %v382_v9 = vld [vmem:[%s617_s0 + $0x10] sm:$0xff] }
   0x3   :  { %v380_v8 = vld [vmem:[%s617_s0] sm:$0xff]  ;;  %v386_v11 = vld [vmem:[%s617_s0 + $0x30] sm:$0xff]  ;;  %v381_v12 = vld [vmem:[%s617_s0 + $0x8] sm:$0xff] }
   0x4   :  { %v102_v2 = vpack.c.b16 %v97_v1, %v97_v1  ;;  %v384_v10 = vld [vmem:[%s617_s0 + $0x20] sm:$0xff]  ;;  %v383_v13 = vld [vmem:[%s617_s0 + $0x18] sm:$0xff]  ;;  %v385_v14 = vld [vmem:[%s617_s0 + $0x28] sm:$0xff] }
   0x5   :  { %v387_v15 = vld [vmem:[%s617_s0 + $0x38] sm:$0xff] }
   0x6   :  { %v134_v3 = vsel %vm132_vm0, %v102_v2, 0 }
   0x7   :  { %139 = vmatpush.bf16.msra.mxu0 %v134_v3  ;;  %392 = vmatpush.bf16.msra.mxu1 %v134_v3 }
   0x8   :  { %393 = vmatpush.bf16.msra.mxu2 %v134_v3  ;;  %394 = vmatpush.bf16.msra.mxu3 %v134_v3 }
   0xb   :  { %140 = vmatpush.bf16.msra.mxu0 %v391_v4  ;;  %395 = vmatpush.bf16.msra.mxu1 %v391_v4 }
   0xc   :  { %396 = vmatpush.bf16.msra.mxu2 %v391_v4  ;;  %397 = vmatpush.bf16.msra.mxu3 %v391_v4 }
   0xf   :  { %141 = vmatpush.bf16.msra.mxu0 %v390_v5  ;;  %398 = vmatpush.bf16.msra.mxu1 %v390_v5 }
  0x10   :  { %399 = vmatpush.bf16.msra.mxu2 %v390_v5  ;;  %400 = vmatpush.bf16.msra.mxu3 %v390_v5 }
  0x13   :  { %142 = vmatpush.bf16.msra.mxu0 %v389_v6  ;;  %401 = vmatpush.bf16.msra.mxu1 %v389_v6 }
  0x14   :  { %402 = vmatpush.bf16.msra.mxu2 %v389_v6  ;;  %403 = vmatpush.bf16.msra.mxu3 %v389_v6 }
  0x17   :  { %143 = vmatpush.bf16.msra.mxu0 %v388_v7  ;;  %404 = vmatpush.bf16.msra.mxu1 %v388_v7 }
  0x18   :  { %405 = vmatpush.bf16.msra.mxu2 %v388_v7  ;;  %406 = vmatpush.bf16.msra.mxu3 %v388_v7 }
  0x1a   :  { %372 = vmatmul.msk.bf16.vlgmr.msra.gmra.mxu0 %vm107_vm1, %v380_v8  ;;  %374 = vmatmul.msk.bf16.vlgmr.msra.gmra.mxu1 %vm107_vm1, %v382_v9 }
  0x1b   :  { %376 = vmatmul.msk.bf16.vlgmr.msra.gmra.mxu2 %vm107_vm1, %v384_v10  ;;  %378 = vmatmul.msk.bf16.vlgmr.msra.gmra.mxu3 %vm107_vm1, %v386_v11 }
  0x2a   :  { %373 = vmatmul.msk.bf16.gmra.mxu0 %vm107_vm1, %v381_v12  ;;  %375 = vmatmul.msk.bf16.gmra.mxu1 %vm107_vm1, %v383_v13 }
  0x2b   :  { %377 = vmatmul.msk.bf16.gmra.mxu2 %vm107_vm1, %v385_v14  ;;  %379 = vmatmul.msk.bf16.gmra.mxu3 %vm107_vm1, %v387_v15 }
  0x97   :  { %v145_v16 = vpop.f32.mrf.mxu0  ;;  %v155_v17 = vpop.f32.mrf.mxu1 }
  0x98   :  { %v185_v18 = vpack.c.bf16 %v145_v16, %v145_v16  ;;  %v189_v19 = vpack.c.bf16 %v155_v17, %v155_v17  ;;  %v258_v37 = vmul.f32 %v145_v16, %v145_v16  ;;  %v219_v40 = vsel %vm218_vm3, %v145_v16, 0.0 }
  0x99   :  { %v262_v45 = vmul.f32 %v155_v17, %v155_v17  ;;  %v226_v61 = vsel %vm218_vm3, %v155_v17, 0.0 }
  0x9a   :  { %202 = vst.msk [vmem:[%s618_s2] sm:$0xf] %vm201_vm2, %v185_v18  ;;  %v274_v44 = vsel %vm218_vm3, %v258_v37, 0.0 }
  0x9b   :  { %206 = vst.msk [vmem:[%s618_s2 + $0x10] sm:$0xf] %vm201_vm2, %v189_v19  ;;  %v281_v2 = vsel %vm218_vm3, %v262_v45, 0.0 }
  0x9e   :  { %v487_v20 = vpop.f32.mrf.mxu2  ;;  %v489_v21 = vpop.f32.mrf.mxu3 }
  0x9f   :  { %v147_v22 = vpop.f32.mrf.mxu0  ;;  %v157_v23 = vpop.f32.mrf.mxu1  ;;  %v193_v24 = vpack.c.bf16 %v487_v20, %v487_v20  ;;  %v197_v27 = vpack.c.bf16 %v489_v21, %v489_v21  ;;  %v266_v15 = vmul.f32 %v487_v20, %v487_v20 }
  0xa0   :  { %v186_v25 = vpack.c.bf16 %v147_v22, %v147_v22  ;;  %v190_v26 = vpack.c.bf16 %v157_v23, %v157_v23  ;;  %v259_v33 = vmul.f32 %v147_v22, %v147_v22  ;;  %v220_v38 = vsel %vm218_vm3, %v147_v22, 0.0 }
  0xa1   :  { %210 = vst.msk [vmem:[%s618_s2 + $0x20] sm:$0xf] %vm201_vm2, %v193_v24  ;;  %v221_v43 = vadd.f32 %v220_v38, %v219_v40  ;;  %v263_v62 = vmul.f32 %v157_v23, %v157_v23  ;;  %v228_v3 = vsel %vm218_vm3, %v157_v23, 0.0  ;;  %v234_v23 = vsel %vm218_vm3, %v487_v20, 0.0 }
  0xa2   :  { %203 = vst.msk [vmem:[%s618_s2 + $0x4] sm:$0xf] %vm201_vm2, %v186_v25  ;;  %v275_v41 = vsel %vm218_vm3, %v259_v33, 0.0 }
  0xa3   :  { %207 = vst.msk [vmem:[%s618_s2 + $0x14] sm:$0xf] %vm201_vm2, %v190_v26  ;;  %v276_v49 = vadd.f32 %v275_v41, %v274_v44  ;;  %v283_v7 = vsel %vm218_vm3, %v263_v62, 0.0 }
  0xa4   :  { %214 = vst.msk [vmem:[%s618_s2 + $0x30] sm:$0xf] %vm201_vm2, %v197_v27 }
  0xa6   :  { %v511_v28 = vpop.f32.mrf.mxu2  ;;  %v513_v29 = vpop.f32.mrf.mxu3 }
  0xa7   :  { %v150_v30 = vpop.f32.mrf.mxu0  ;;  %v160_v31 = vpop.f32.mrf.mxu1  ;;  %v194_v32 = vpack.c.bf16 %v511_v28, %v511_v28  ;;  %v198_v36 = vpack.c.bf16 %v513_v29, %v513_v29  ;;  %v267_v24 = vmul.f32 %v511_v28, %v511_v28  ;;  %v271_v44 = vmul.f32 %v513_v29, %v513_v29 }
  0xa8   :  { %v187_v34 = vpack.c.bf16 %v150_v30, %v150_v30  ;;  %v191_v35 = vpack.c.bf16 %v160_v31, %v160_v31  ;;  %v260_v39 = vmul.f32 %v150_v30, %v150_v30  ;;  %v222_v42 = vsel %vm218_vm3, %v150_v30, 0.0 }
  0xa9   :  { %211 = vst.msk [vmem:[%s618_s2 + $0x24] sm:$0xf] %vm201_vm2, %v194_v32  ;;  %v223_v50 = vadd.f32 %v222_v42, %v221_v43  ;;  %v264_v4 = vmul.f32 %v160_v31, %v160_v31  ;;  %v230_v8 = vsel %vm218_vm3, %v160_v31, 0.0  ;;  %v289_v30 = vsel %vm218_vm3, %v266_v15, 0.0 }
  0xaa   :  { %204 = vst.msk [vmem:[%s618_s2 + $0x8] sm:$0xf] %vm201_vm2, %v187_v34  ;;  %v277_v46 = vsel %vm218_vm3, %v260_v39, 0.0  ;;  %v236_v31 = vsel %vm218_vm3, %v511_v28, 0.0  ;;  %v291_v34 = vsel %vm218_vm3, %v267_v24, 0.0  ;;  %v270_v39 = vmul.f32 %v489_v21, %v489_v21 }
  0xab   :  { %208 = vst.msk [vmem:[%s618_s2 + $0x18] sm:$0xf] %vm201_vm2, %v191_v35  ;;  %v278_v59 = vadd.f32 %v277_v46, %v276_v49  ;;  %v285_v16 = vsel %vm218_vm3, %v264_v4, 0.0  ;;  %v242_v28 = vsel %vm218_vm3, %v489_v21, 0.0 }
  0xac   :  { %215 = vst.msk [vmem:[%s618_s2 + $0x34] sm:$0xf] %vm201_vm2, %v198_v36  ;;  %v297_v49 = vsel %vm218_vm3, %v270_v39, 0.0 }
  0xae   :  { %v170_v47 = vpop.f32.mrf.mxu2  ;;  %v541_v48 = vpop.f32.mrf.mxu3 }
  0xaf   :  { %v152_v51 = vpop.f32.mrf.mxu0  ;;  %v162_v52 = vpop.f32.mrf.mxu1  ;;  %v195_v53 = vpack.c.bf16 %v170_v47, %v170_v47  ;;  %v199_v54 = vpack.c.bf16 %v541_v48, %v541_v48  ;;  %v268_v32 = vmul.f32 %v170_v47, %v170_v47  ;;  %v238_v35 = vsel %vm218_vm3, %v170_v47, 0.0 }
  0xb0   :  { %v188_v55 = vpack.c.bf16 %v152_v51, %v152_v51  ;;  %v224_v56 = vsel %vm218_vm3, %v152_v51, 0.0  ;;  %v261_v57 = vmul.f32 %v152_v51, %v152_v51  ;;  %v192_v58 = vpack.c.bf16 %v162_v52, %v162_v52 }
  0xb1   :  { %v225_v60 = vadd.f32 %v224_v56, %v223_v50  ;;  %212 = vst.msk [vmem:[%s618_s2 + $0x28] sm:$0xf] %vm201_vm2, %v195_v53  ;;  %v265_v9 = vmul.f32 %v162_v52, %v162_v52  ;;  %v232_v17 = vsel %vm218_vm3, %v162_v52, 0.0  ;;  %v293_v40 = vsel %vm218_vm3, %v268_v32, 0.0 }
  0xb2   :  { %205 = vst.msk [vmem:[%s618_s2 + $0xc] sm:$0xf] %vm201_vm2, %v188_v55  ;;  %v279_v63 = vsel %vm218_vm3, %v261_v57, 0.0  ;;  %v244_v50 = vsel %vm218_vm3, %v513_v29, 0.0  ;;  %v272_v51 = vmul.f32 %v541_v48, %v541_v48  ;;  %v246_v21 = vsel %vm218_vm3, %v541_v48, 0.0 }
  0xb3   :  { %v227_v0 = vadd.f32 %v226_v61, %v225_v60  ;;  %v280_v1 = vadd.f32 %v279_v63, %v278_v59  ;;  %209 = vst.msk [vmem:[%s618_s2 + $0x1c] sm:$0xf] %vm201_vm2, %v192_v58  ;;  %v287_v25 = vsel %vm218_vm3, %v265_v9, 0.0 }
  0xb4   :  { %216 = vst.msk [vmem:[%s618_s2 + $0x38] sm:$0xf] %vm201_vm2, %v199_v54  ;;  %v299_v54 = vsel %vm218_vm3, %v271_v44, 0.0  ;;  %v301_v58 = vsel %vm218_vm3, %v272_v51, 0.0 }
  0xb5   :  { %v282_v5 = vadd.f32 %v281_v2, %v280_v1  ;;  %v229_v6 = vadd.f32 %v228_v3, %v227_v0 }
  0xb6   :  { %v172_v10 = vpop.f32.mrf.mxu2  ;;  %v182_v11 = vpop.f32.mrf.mxu3 }
  0xb7   :  { %v231_v12 = vadd.f32 %v230_v8, %v229_v6  ;;  %v284_v13 = vadd.f32 %v283_v7, %v282_v5  ;;  %v196_v14 = vpack.c.bf16 %v172_v10, %v172_v10  ;;  %v200_v18 = vpack.c.bf16 %v182_v11, %v182_v11 }
  0xb8   :  { %v269_v36 = vmul.f32 %v172_v10, %v172_v10  ;;  %v240_v41 = vsel %vm218_vm3, %v172_v10, 0.0  ;;  %v273_v55 = vmul.f32 %v182_v11, %v182_v11  ;;  %v248_v59 = vsel %vm218_vm3, %v182_v11, 0.0 }
  0xb9   :  { %v233_v19 = vadd.f32 %v232_v17, %v231_v12  ;;  %v286_v22 = vadd.f32 %v285_v16, %v284_v13  ;;  %213 = vst.msk [vmem:[%s618_s2 + $0x2c] sm:$0xf] %vm201_vm2, %v196_v14 }
  0xba   :  { %217 = vst.msk [vmem:[%s618_s2 + $0x3c] sm:$0xf] %vm201_vm2, %v200_v18  ;;  %v295_v45 = vsel %vm218_vm3, %v269_v36, 0.0  ;;  %v303_v29 = vsel %vm218_vm3, %v273_v55, 0.0 }
  0xbb   :  { %v235_v26 = vadd.f32 %v234_v23, %v233_v19  ;;  %v288_v27 = vadd.f32 %v287_v25, %v286_v22 }
  0xbd   :  { %v290_v33 = vadd.f32 %v289_v30, %v288_v27  ;;  %v237_v20 = vadd.f32 %v236_v31, %v235_v26 }
  0xbf   :  { %v239_v37 = vadd.f32 %v238_v35, %v237_v20  ;;  %v292_v38 = vadd.f32 %v291_v34, %v290_v33 }
  0xc1   :  { %v294_v42 = vadd.f32 %v293_v40, %v292_v38  ;;  %v241_v43 = vadd.f32 %v240_v41, %v239_v37 }
  0xc3   :  { %v243_v46 = vadd.f32 %v242_v28, %v241_v43  ;;  %v296_v47 = vadd.f32 %v295_v45, %v294_v42 }
  0xc5   :  { %v298_v52 = vadd.f32 %v297_v49, %v296_v47  ;;  %v245_v53 = vadd.f32 %v244_v50, %v243_v46 }
  0xc7   :  { %v247_v56 = vadd.f32 %v246_v21, %v245_v53  ;;  %v300_v57 = vadd.f32 %v299_v54, %v298_v52 }
  0xc9   :  { %v302_v60 = vadd.f32 %v301_v58, %v300_v57  ;;  %v249_v61 = vadd.f32 %v248_v59, %v247_v56 }
  0xcb   :  { %v250_v62 = vrot.slane %v249_v61, 4  ;;  %v304_v63 = vadd.f32 %v303_v29, %v302_v60 }
  0xcd   :  { %v251_v0 = vadd.f32 %v250_v62, %v249_v61  ;;  %v305_v1 = vrot.slane %v304_v63, 4 }
  0xcf   :  { %v252_v2 = vrot.slane %v251_v0, 2  ;;  %v306_v3 = vadd.f32 %v305_v1, %v304_v63 }
  0xd1   :  { %v253_v4 = vadd.f32 %v252_v2, %v251_v0  ;;  %v307_v5 = vrot.slane %v306_v3, 2 }
  0xd3   :  { %v254_v48 = vrot.slane %v253_v4, 1  ;;  %v308_v6 = vadd.f32 %v307_v5, %v306_v3 }
  0xd5   :  { %v255_v7 = vadd.f32 %v254_v48, %v253_v4  ;;  %v309_v8 = vrot.slane %v308_v6, 1 }
  0xd7   :  { %257 = vst.msk [vmem:[%s619_s3] sm:$0x1] %vm256_vm4, %v255_v7  ;;  %v310_v9 = vadd.f32 %v309_v8, %v308_v6 }
  0xd9   :  { %311 = vst.msk [vmem:[%s620_s4] sm:$0x1] %vm256_vm4, %v310_v9 }

// kernel: focus_forward.7
= control target key start
LH: loop header
LB: loop body
LE: loop exit
PB: predicated region body
PF: predicated region fallthrough
CT: control target
= control target key end

     0   :  { %s83_s0 = inlined_call_operand.vmem [shape: bf16[16,128], index: 0, kind: input, shape index: {}]   ;;  %s84_s1 = inlined_call_operand.vmem [shape: f32[1,128], index: 1, kind: input, shape index: {}]   ;;  %s85_s2 = inlined_call_operand.vmem [shape: f32[1,128], index: 2, kind: input, shape index: {}]   ;;  %s86_s3 = inlined_call_operand.vmem [shape: f32[16,128], index: 3, kind: output, shape index: {}]  }
   0x1   :  { %v43_v0 = vld [vmem:[%s83_s0] sm:$0xff]  }
   0x2   :  { %v46_v1 = vld [vmem:[%s84_s1] ss:$0 sm:$0xff]  ;;  %v44_v2 = vunpack.c.l.bf16 %v43_v0  ;;  %v45_v4 = vunpack.c.h.bf16 %v43_v0 }
   0x3   :  { %v47_v3 = vld [vmem:[%s85_s2] ss:$0 sm:$0xff] }
   0x4   :  { %v22_v5 = vmul.f32 %v46_v1, %v44_v2  ;;  %v23_v6 = vmul.f32 %v46_v1, %v45_v4 }
   0x6   :  { %v28_v7 = vadd.f32 %v47_v3, %v22_v5  ;;  %v29_v8 = vadd.f32 %v47_v3, %v23_v6 }
   0x8   :  { %vm30_vm0 = vcmp.ge.f32.partialorder %v28_v7, 0.0  ;;  %v32_v9 = vmul.f32 0.01, %v28_v7  ;;  %vm31_vm1 = vcmp.ge.f32.partialorder %v29_v8, 0.0  ;;  %v33_v10 = vmul.f32 0.01, %v29_v8 }
   0xa   :  { %v34_v11 = vsel %vm30_vm0, %v28_v7, %v32_v9  ;;  %v35_v12 = vsel %vm31_vm1, %v29_v8, %v33_v10 }
   0xb   :  { %36 = vst [vmem:[%s86_s3] sm:$0xff] %v34_v11 }
   0xc   :  { %37 = vst [vmem:[%s86_s3 + $0x8] sm:$0xff] %v35_v12 }

</bundles_post_ra>
